<compile_context>
chip_gen: v7x
topology: tpu7x:2x2x1
jax: 0.10.0
libtpu: 0.0.40
codegen_flags: <defaults>
</compile_context>

<pallas_src>
import jax
import jax.numpy as jnp
from jax import lax
from jax.experimental import pallas as pl
from jax.experimental.pallas import tpu as pltpu


# ----------------------------------------------------------------------------
# Fused kernel: dense-adjacency edge-attention GAT + single-layer batch_first
# LSTM returning hn[-1].
# ----------------------------------------------------------------------------
def combined_kernel(
    x_ref,            # (N, Fin)    f32
    edge_attr_ref,    # (E, Edim)   f32
    edge_index_ref,   # (2, E)      int32   row 0 = src, row 1 = dst
    gat_params_ref,   # (Fin+Edim+4, Fout) f32  packed GAT params
    temporal_ref,     # (T, B, 1)   f32     time-leading layout
    lstm_params_ref,  # (H+2, 4H)   f32     packed LSTM params, gates [f|i|o|g]
    gat_out_ref,      # (N, Fout)   f32
    lstm_out_ref,     # (B, H)      f32
):
    f32 = jnp.float32

    # ======================= GAT branch =======================
    n = gat_out_ref.shape[0]
    fin = x_ref.shape[1]
    e_cnt = edge_attr_ref.shape[0]
    edim = edge_attr_ref.shape[1]

    gp = gat_params_ref[...]                       # (Fin+Edim+4, Fout)
    w_gat = gp[0:fin, :]                           # (Fin, Fout)
    w_edge = gp[fin:fin + edim, :]                 # (Edim, Fout)
    att_src = gp[fin + edim:fin + edim + 1, :]     # (1, Fout)
    att_dst = gp[fin + edim + 1:fin + edim + 2, :]  # (1, Fout)
    att_edge = gp[fin + edim + 2:fin + edim + 3, :]  # (1, Fout)
    bias_g = gp[fin + edim + 3:fin + edim + 4, :]  # (1, Fout)

    h = jnp.dot(x_ref[...], w_gat, preferred_element_type=f32)           # (N, Fout)
    s_dst = jnp.sum(h * att_dst, axis=-1, keepdims=True)                 # (N, 1)
    s_src = jnp.sum(h * att_src, axis=-1)[None, :]                       # (1, N)

    edge_proj = jnp.dot(edge_attr_ref[...], w_edge,
                        preferred_element_type=f32)                      # (E, Fout)
    edge_score = jnp.sum(edge_proj * att_edge, axis=-1)[None, :]         # (1, E)

    src_row = edge_index_ref[0:1, :]                                     # (1, E) int32
    dst_row = edge_index_ref[1:2, :]                                     # (1, E) int32

    # Fused one-hot scatter: one (2N,E)@(E,N)^T matmul yields both the dense
    # adjacency counts (rows 0:N) and the edge-attention bias (rows N:2N).
    row_idx = lax.broadcasted_iota(jnp.int32, (2 * n, e_cnt), 0)          # (2N, E)
    node_id = jnp.where(row_idx >= n, row_idx - n, row_idx)               # node per row
    dst_oh2 = (dst_row == node_id).astype(f32)                           # (2N, E)
    scale = jnp.where(row_idx >= n, edge_score, f32(1.0))                 # (2N, E)
    lhs = dst_oh2 * scale

    node_iota = lax.broadcasted_iota(jnp.int32, (n, e_cnt), 0)            # (N, E)
    src_oh = (src_row == node_iota).astype(f32)                           # (N, E)

    res = lax.dot_general(lhs, src_oh, (((1,), (1,)), ((), ())),
                          preferred_element_type=f32)                     # (2N, N)
    adj = res[:n, :]                                                      # (N, N) counts
    edge_bias = res[n:, :]                                                # (N, N)

    e_log = s_dst + s_src + edge_bias
    e_log = jnp.where(e_log > 0, e_log, 0.2 * e_log)                      # LeakyReLU(0.2)
    e_log = jnp.where(adj > 0, e_log, f32(-1e9))                          # single masking

    m = jnp.max(e_log, axis=-1, keepdims=True)
    p = jnp.exp(e_log - m)
    denom = jnp.sum(p, axis=-1, keepdims=True)
    # approx reciprocal (EUP): ~1e-4 rel. error vs exact softmax normalization.
    alpha = p * pl.reciprocal(denom, approx=True)

    gat = jnp.dot(alpha, h, preferred_element_type=f32) + bias_g
    gat_out_ref[...] = gat.astype(gat_out_ref.dtype)

    # ======================= LSTM branch =======================
    t_steps = temporal_ref.shape[0]
    batch = temporal_ref.shape[1]
    four_h = lstm_params_ref.shape[1]
    hidden = lstm_params_ref.shape[0] - 2

    lp = lstm_params_ref[...]                       # (H+2, 4H)
    whh = lp[0:hidden, :]                           # (H, 4H)   recurrent weights
    wih = lp[hidden:hidden + 1, :]                  # (1, 4H)   input weights (input_size=1)
    b_l = lp[hidden + 1:hidden + 2, :]              # (1, 4H)   bias_ih + bias_hh

    # Hoisted input projection for ALL steps, time-leading: (T, B, 4H).
    gx_all = (temporal_ref[...] * wih.reshape(1, 1, four_h)
              + b_l.reshape(1, 1, four_h))

    h_t = jnp.zeros((batch, hidden), f32)
    c_t = jnp.zeros((batch, hidden), f32)

    # T is a compile-time constant -> fully unrolled recurrence.
    # Gate layout [f | i | o | g].
    for t in range(t_steps):
        gates = gx_all[t] + jnp.dot(h_t, whh, preferred_element_type=f32)  # (B, 4H)
        sig = jax.nn.sigmoid(gates[:, :3 * hidden])        # [f|i|o] one EUP region
        f_g = sig[:, :hidden]
        i_g = sig[:, hidden:2 * hidden]
        o_g = sig[:, 2 * hidden:3 * hidden]
        g_g = jnp.tanh(gates[:, 3 * hidden:])              # [g]
        c_t = f_g * c_t + i_g * g_g
        h_t = o_g * jnp.tanh(c_t)

    lstm_out_ref[...] = h_t.astype(lstm_out_ref.dtype)


# ----------------------------------------------------------------------------
# Parameter packing (done ONCE at parameter-construction time).
# ----------------------------------------------------------------------------
def pack_params(p):
    """PyTorch-layout params -> two packed kernel buffers."""
    gat_params = jnp.concatenate(
        [p["w_gat"], p["w_edge"], p["att_src"], p["att_dst"],
         p["att_edge"], p["bias_gat"]], axis=0).astype(jnp.float32)

    # PyTorch gate order [i|f|g|o]  ->  kernel order [f|i|o|g]
    def perm(mat):
        i_w, f_w, g_w, o_w = jnp.split(mat, 4, axis=-1)
        return jnp.concatenate([f_w, i_w, o_w, g_w], axis=-1)

    lstm_params = jnp.concatenate(
        [perm(p["w_hh_t"]), perm(p["w_ih_t"]), perm(p["b_lstm"])],
        axis=0).astype(jnp.float32)

    return {"gat_params": gat_params, "lstm_params": lstm_params}


# ----------------------------------------------------------------------------
# CombinedModel.forward(x, edge_index, edge_attr, temporal_features)
# ----------------------------------------------------------------------------
def combined_forward(packed, x, edge_index, edge_attr, temporal_features):
    n, fin = x.shape
    e_cnt, edim = edge_attr.shape
    f_out = packed["gat_params"].shape[1]
    b, t_steps, _ = temporal_features.shape
    hidden = packed["lstm_params"].shape[0] - 2

    ei = edge_index.astype(jnp.int32)                                   # (2, E)
    # layout plumbing: time-leading temporal for the kernel
    temporal_tb = jnp.transpose(temporal_features.astype(jnp.float32),
                                (1, 0, 2))                              # (T, B, 1)

    flops = (2 * n * fin * f_out                 # x @ w_gat
             + 2 * e_cnt * edim * f_out          # edge_attr @ w_edge
             + 2 * (2 * n) * e_cnt * n           # fused one-hot scatter
             + 2 * n * n * f_out                 # alpha @ h
             + t_steps * 2 * b * hidden * 4 * hidden)  # recurrence
    transcendentals = n * n + t_steps * b * 4 * hidden
    bytes_accessed = 4 * (x.size + edge_attr.size + ei.size
                          + packed["gat_params"].size + temporal_tb.size
                          + packed["lstm_params"].size
                          + n * f_out + b * hidden)

    vmem = pl.BlockSpec(memory_space=pltpu.MemorySpace.VMEM)
    gat_out, lstm_out = pl.pallas_call(
        combined_kernel,
        out_shape=(jax.ShapeDtypeStruct((n, f_out), jnp.float32),
                   jax.ShapeDtypeStruct((b, hidden), jnp.float32)),
        in_specs=[vmem] * 6,
        out_specs=(vmem, vmem),
        cost_estimate=pl.CostEstimate(flops=flops,
                                      transcendentals=transcendentals,
                                      bytes_accessed=bytes_accessed),
    )(
        x.astype(jnp.float32),
        edge_attr.astype(jnp.float32),
        ei,
        packed["gat_params"],
        temporal_tb,
        packed["lstm_params"],
    )
    return gat_out, lstm_out


combined_forward_jit = jax.jit(combined_forward)


# ----------------------------------------------------------------------------
# Deterministic parameter / input construction and a single test run.
# ----------------------------------------------------------------------------
def make_params(key, f_in, f_out, edge_dim, hidden):
    ks = jax.random.split(key, 10)
    s = 0.1
    return {
        # GAT layer
        "w_gat":    s * jax.random.normal(ks[0], (f_in, f_out), jnp.float32),
        "att_src":  s * jax.random.normal(ks[1], (1, f_out), jnp.float32),
        "att_dst":  s * jax.random.normal(ks[2], (1, f_out), jnp.float32),
        "w_edge":   s * jax.random.normal(ks[3], (edge_dim, f_out), jnp.float32),
        "att_edge": s * jax.random.normal(ks[4], (1, f_out), jnp.float32),
        "bias_gat": s * jax.random.normal(ks[5], (1, f_out), jnp.float32),
        # LSTM (PyTorch W_ih (4H,1), W_hh (4H,H) stored transposed, gate order
        # [i|f|g|o]; b_lstm = bias_ih + bias_hh combined)
        "w_ih_t":   s * jax.random.normal(ks[6], (1, 4 * hidden), jnp.float32),
        "w_hh_t":   s * jax.random.normal(ks[7], (hidden, 4 * hidden), jnp.float32),
        "b_lstm":   s * jax.random.normal(ks[8], (1, 4 * hidden), jnp.float32),
    }


if __name__ == "__main__":
    key = jax.random.PRNGKey(0)
    k_x, k_e, k_a, k_t, k_p = jax.random.split(key, 5)

    # small deterministic shapes implied by the forward pass
    N, F_IN, F_OUT = 16, 8, 32          # graph: 16 nodes, 8-dim features
    E_RAND, EDGE_DIM = 40, 4            # 40 random edges + 16 self-loops
    B, T, HIDDEN = 2, 8, 64             # TransactionLSTM(1, 64), seq len 8

    x = jax.random.normal(k_x, (N, F_IN), jnp.float32)

    rand_edges = jax.random.randint(k_e, (2, E_RAND), 0, N)
    self_loops = jnp.stack([jnp.arange(N), jnp.arange(N)])
    edge_index = jnp.concatenate([rand_edges, self_loops], axis=1)      # (2, 56)

    edge_attr_rand = jax.random.normal(k_a, (E_RAND, EDGE_DIM), jnp.float32)
    edge_attr = jnp.concatenate(
        [edge_attr_rand, jnp.zeros((N, EDGE_DIM), jnp.float32)], axis=0)  # (56, 4)

    temporal_features = jax.random.normal(k_t, (B, T, 1), jnp.float32)

    params = make_params(k_p, F_IN, F_OUT, EDGE_DIM, HIDDEN)
    packed = pack_params(params)        # one-time packing (not per call)

    gat_out, lstm_out = combined_forward_jit(
        packed, x, edge_index, edge_attr, temporal_features)
    jax.block_until_ready(gat_out)
    jax.block_until_ready(lstm_out)

    assert gat_out.shape == (N, F_OUT)
    assert lstm_out.shape == (B, HIDDEN)
    assert bool(jnp.all(jnp.isfinite(gat_out)))
    assert bool(jnp.all(jnp.isfinite(lstm_out)))
    print("KERNEL_OK")
</pallas_src>

<mosaic_0001>
module attributes {stable_mosaic.version = 11 : i64} {
  func.func @combined_kernel(%arg0: memref<16x8xf32, #tpu.memory_space<vmem>>, %arg1: memref<56x4xf32, #tpu.memory_space<vmem>>, %arg2: memref<2x56xi32, #tpu.memory_space<vmem>>, %arg3: memref<16x32xf32, #tpu.memory_space<vmem>>, %arg4: memref<8x2x1xf32, #tpu.memory_space<vmem>>, %arg5: memref<66x256xf32, #tpu.memory_space<vmem>>, %arg6: memref<16x32xf32, #tpu.memory_space<vmem>>, %arg7: memref<2x64xf32, #tpu.memory_space<vmem>>) attributes {dimension_semantics = [], scalar_prefetch = 0 : i64, scratch_operands = 0 : i64, tpu.core_type = #tpu.core_type<tc>} {
    %c0 = arith.constant 0 : index
    %c0_0 = arith.constant 0 : index
    %0 = vector.load %arg3[%c0, %c0_0] : memref<16x32xf32, #tpu.memory_space<vmem>>, vector<16x32xf32>
    %1 = vector.extract_strided_slice %0 {offsets = [0, 0], sizes = [8, 32], strides = [1, 1]} : vector<16x32xf32> to vector<8x32xf32>
    %2 = vector.extract_strided_slice %0 {offsets = [8, 0], sizes = [4, 32], strides = [1, 1]} : vector<16x32xf32> to vector<4x32xf32>
    %3 = vector.extract_strided_slice %0 {offsets = [12, 0], sizes = [1, 32], strides = [1, 1]} : vector<16x32xf32> to vector<1x32xf32>
    %4 = vector.extract_strided_slice %0 {offsets = [13, 0], sizes = [1, 32], strides = [1, 1]} : vector<16x32xf32> to vector<1x32xf32>
    %5 = vector.extract_strided_slice %0 {offsets = [14, 0], sizes = [1, 32], strides = [1, 1]} : vector<16x32xf32> to vector<1x32xf32>
    %6 = vector.extract_strided_slice %0 {offsets = [15, 0], sizes = [1, 32], strides = [1, 1]} : vector<16x32xf32> to vector<1x32xf32>
    %c0_1 = arith.constant 0 : index
    %c0_2 = arith.constant 0 : index
    %7 = vector.load %arg0[%c0_1, %c0_2] : memref<16x8xf32, #tpu.memory_space<vmem>>, vector<16x8xf32>
    %cst = arith.constant dense<0.000000e+00> : vector<16x32xf32>
    %8 = tpu.matmul %7, %1, %cst {dimension_numbers = #tpu.dot_dimension_numbers<[1], [0], [0], [1], [0, 0, 1, 1], [], []>} : vector<16x8xf32>, vector<8x32xf32>, vector<16x32xf32> -> vector<16x32xf32>
    %9 = vector.broadcast %4 : vector<1x32xf32> to vector<16x32xf32>
    %10 = arith.mulf %8, %9 : vector<16x32xf32>
    %cst_3 = arith.constant dense<0.000000e+00> : vector<16xf32>
    %11 = vector.multi_reduction <add>, %10, %cst_3 [1] : vector<16x32xf32> to vector<16xf32>
    %12 = vector.shape_cast %11 : vector<16xf32> to vector<16x1xf32>
    %13 = vector.broadcast %3 : vector<1x32xf32> to vector<16x32xf32>
    %14 = arith.mulf %8, %13 : vector<16x32xf32>
    %cst_4 = arith.constant dense<0.000000e+00> : vector<16xf32>
    %15 = vector.multi_reduction <add>, %14, %cst_4 [1] : vector<16x32xf32> to vector<16xf32>
    %16 = vector.shape_cast %15 : vector<16xf32> to vector<1x16xf32>
    %c0_5 = arith.constant 0 : index
    %c0_6 = arith.constant 0 : index
    %17 = vector.load %arg1[%c0_5, %c0_6] : memref<56x4xf32, #tpu.memory_space<vmem>>, vector<56x4xf32>
    %cst_7 = arith.constant dense<0.000000e+00> : vector<56x32xf32>
    %18 = tpu.matmul %17, %2, %cst_7 {dimension_numbers = #tpu.dot_dimension_numbers<[1], [0], [0], [1], [0, 0, 1, 1], [], []>} : vector<56x4xf32>, vector<4x32xf32>, vector<56x32xf32> -> vector<56x32xf32>
    %19 = vector.broadcast %5 : vector<1x32xf32> to vector<56x32xf32>
    %20 = arith.mulf %18, %19 : vector<56x32xf32>
    %cst_8 = arith.constant dense<0.000000e+00> : vector<56xf32>
    %21 = vector.multi_reduction <add>, %20, %cst_8 [1] : vector<56x32xf32> to vector<56xf32>
    %22 = vector.shape_cast %21 : vector<56xf32> to vector<1x56xf32>
    %c0_9 = arith.constant 0 : index
    %c0_10 = arith.constant 0 : index
    %23 = vector.load %arg2[%c0_9, %c0_10] : memref<2x56xi32, #tpu.memory_space<vmem>>, vector<1x56xi32>
    %c1 = arith.constant 1 : index
    %c0_11 = arith.constant 0 : index
    %24 = vector.load %arg2[%c1, %c0_11] : memref<2x56xi32, #tpu.memory_space<vmem>>, vector<1x56xi32>
    %25 = tpu.iota {dimensions = array<i32: 0>} : vector<32x56xi32>
    %c16_i32 = arith.constant 16 : i32
    %26 = vector.broadcast %c16_i32 : i32 to vector<32x56xi32>
    %27 = arith.cmpi sge, %25, %26 : vector<32x56xi32>
    %c16_i32_12 = arith.constant 16 : i32
    %28 = vector.broadcast %c16_i32_12 : i32 to vector<32x56xi32>
    %29 = arith.subi %25, %28 : vector<32x56xi32>
    %30 = arith.select %27, %29, %25 : vector<32x56xi1>, vector<32x56xi32>
    %31 = vector.broadcast %24 : vector<1x56xi32> to vector<32x56xi32>
    %32 = arith.cmpi eq, %31, %30 : vector<32x56xi32>
    %33 = arith.extui %32 : vector<32x56xi1> to vector<32x56xi32>
    %34 = arith.sitofp %33 : vector<32x56xi32> to vector<32x56xf32>
    %c16_i32_13 = arith.constant 16 : i32
    %35 = vector.broadcast %c16_i32_13 : i32 to vector<32x56xi32>
    %36 = arith.cmpi sge, %25, %35 : vector<32x56xi32>
    %cst_14 = arith.constant 1.000000e+00 : f32
    %37 = vector.shape_cast %22 : vector<1x56xf32> to vector<1x56xf32>
    %38 = vector.broadcast %37 : vector<1x56xf32> to vector<32x56xf32>
    %39 = vector.broadcast %cst_14 : f32 to vector<32x56xf32>
    %40 = arith.select %36, %38, %39 : vector<32x56xi1>, vector<32x56xf32>
    %41 = arith.mulf %34, %40 : vector<32x56xf32>
    %42 = tpu.iota {dimensions = array<i32: 0>} : vector<16x56xi32>
    %43 = vector.broadcast %23 : vector<1x56xi32> to vector<16x56xi32>
    %44 = arith.cmpi eq, %43, %42 : vector<16x56xi32>
    %45 = arith.extui %44 : vector<16x56xi1> to vector<16x56xi32>
    %46 = arith.sitofp %45 : vector<16x56xi32> to vector<16x56xf32>
    %cst_15 = arith.constant dense<0.000000e+00> : vector<32x16xf32>
    %47 = tpu.matmul %41, %46, %cst_15 {dimension_numbers = #tpu.dot_dimension_numbers<[1], [1], [0], [0], [0, 0, 1, 0], [], []>} : vector<32x56xf32>, vector<16x56xf32>, vector<32x16xf32> -> vector<32x16xf32>
    %48 = vector.extract_strided_slice %47 {offsets = [0, 0], sizes = [16, 16], strides = [1, 1]} : vector<32x16xf32> to vector<16x16xf32>
    %49 = vector.extract_strided_slice %47 {offsets = [16, 0], sizes = [16, 16], strides = [1, 1]} : vector<32x16xf32> to vector<16x16xf32>
    %50 = vector.broadcast %12 : vector<16x1xf32> to vector<16x16xf32>
    %51 = vector.broadcast %16 : vector<1x16xf32> to vector<16x16xf32>
    %52 = arith.addf %50, %51 : vector<16x16xf32>
    %53 = arith.addf %52, %49 : vector<16x16xf32>
    %cst_16 = arith.constant 0.000000e+00 : f32
    %54 = vector.broadcast %cst_16 : f32 to vector<16x16xf32>
    %55 = arith.cmpf ogt, %53, %54 : vector<16x16xf32>
    %cst_17 = arith.constant 2.000000e-01 : f32
    %56 = vector.broadcast %cst_17 : f32 to vector<16x16xf32>
    %57 = arith.mulf %56, %53 : vector<16x16xf32>
    %58 = arith.select %55, %53, %57 : vector<16x16xi1>, vector<16x16xf32>
    %cst_18 = arith.constant 0.000000e+00 : f32
    %59 = vector.broadcast %cst_18 : f32 to vector<16x16xf32>
    %60 = arith.cmpf ogt, %48, %59 : vector<16x16xf32>
    %cst_19 = arith.constant -1.000000e+09 : f32
    %61 = vector.broadcast %cst_19 : f32 to vector<16x16xf32>
    %62 = arith.select %60, %58, %61 : vector<16x16xi1>, vector<16x16xf32>
    %cst_20 = arith.constant dense<0xFF800000> : vector<16xf32>
    %63 = vector.multi_reduction <maximumf>, %62, %cst_20 [1] : vector<16x16xf32> to vector<16xf32>
    %64 = vector.shape_cast %63 : vector<16xf32> to vector<16x1xf32>
    %65 = vector.broadcast %64 : vector<16x1xf32> to vector<16x16xf32>
    %66 = arith.subf %62, %65 : vector<16x16xf32>
    %67 = math.exp %66 : vector<16x16xf32>
    %cst_21 = arith.constant dense<0.000000e+00> : vector<16xf32>
    %68 = vector.multi_reduction <add>, %67, %cst_21 [1] : vector<16x16xf32> to vector<16xf32>
    %69 = vector.shape_cast %68 : vector<16xf32> to vector<16x1xf32>
    %70 = tpu.reciprocal %69 {approx = true} : vector<16x1xf32> -> vector<16x1xf32>
    %71 = vector.broadcast %70 : vector<16x1xf32> to vector<16x16xf32>
    %72 = arith.mulf %67, %71 : vector<16x16xf32>
    %cst_22 = arith.constant dense<0.000000e+00> : vector<16x32xf32>
    %73 = tpu.matmul %72, %8, %cst_22 {dimension_numbers = #tpu.dot_dimension_numbers<[1], [0], [0], [1], [0, 0, 1, 1], [], []>} : vector<16x16xf32>, vector<16x32xf32>, vector<16x32xf32> -> vector<16x32xf32>
    %74 = vector.broadcast %6 : vector<1x32xf32> to vector<16x32xf32>
    %75 = arith.addf %73, %74 : vector<16x32xf32>
    %c0_23 = arith.constant 0 : index
    %c0_24 = arith.constant 0 : index
    %76 = vector.load %arg6[%c0_23, %c0_24] : memref<16x32xf32, #tpu.memory_space<vmem>>, vector<16x32xf32>
    tpu.vector_store %arg6[%c0_23, %c0_24], %75 {strides = array<i32>} : memref<16x32xf32, #tpu.memory_space<vmem>>, vector<16x32xf32>,
    %c0_25 = arith.constant 0 : index
    %c0_26 = arith.constant 0 : index
    %77 = vector.load %arg5[%c0_25, %c0_26] : memref<66x256xf32, #tpu.memory_space<vmem>>, vector<66x256xf32>
    %78 = vector.extract_strided_slice %77 {offsets = [0, 0], sizes = [64, 256], strides = [1, 1]} : vector<66x256xf32> to vector<64x256xf32>
    %79 = vector.extract_strided_slice %77 {offsets = [64, 0], sizes = [1, 256], strides = [1, 1]} : vector<66x256xf32> to vector<1x256xf32>
    %80 = vector.extract_strided_slice %77 {offsets = [65, 0], sizes = [1, 256], strides = [1, 1]} : vector<66x256xf32> to vector<1x256xf32>
    %c0_27 = arith.constant 0 : index
    %c0_28 = arith.constant 0 : index
    %c0_29 = arith.constant 0 : index
    %81 = vector.load %arg4[%c0_27, %c0_28, %c0_29] : memref<8x2x1xf32, #tpu.memory_space<vmem>>, vector<8x2x1xf32>
    %82 = vector.shape_cast %79 : vector<1x256xf32> to vector<1x1x256xf32>
    %83 = vector.broadcast %81 : vector<8x2x1xf32> to vector<8x2x256xf32>
    %84 = vector.broadcast %82 : vector<1x1x256xf32> to vector<8x2x256xf32>
    %85 = arith.mulf %83, %84 : vector<8x2x256xf32>
    %86 = vector.shape_cast %80 : vector<1x256xf32> to vector<1x1x256xf32>
    %87 = vector.broadcast %86 : vector<1x1x256xf32> to vector<8x2x256xf32>
    %88 = arith.addf %85, %87 : vector<8x2x256xf32>
    %cst_30 = arith.constant 0.000000e+00 : f32
    %89 = vector.broadcast %cst_30 : f32 to vector<2x64xf32>
    %cst_31 = arith.constant 0.000000e+00 : f32
    %90 = vector.broadcast %cst_31 : f32 to vector<2x64xf32>
    %91 = vector.extract_strided_slice %88 {offsets = [0, 0, 0], sizes = [1, 2, 256], strides = [1, 1, 1]} : vector<8x2x256xf32> to vector<1x2x256xf32>
    %92 = vector.shape_cast %91 : vector<1x2x256xf32> to vector<2x256xf32>
    %cst_32 = arith.constant dense<0.000000e+00> : vector<2x256xf32>
    %93 = tpu.matmul %89, %78, %cst_32 {dimension_numbers = #tpu.dot_dimension_numbers<[1], [0], [0], [1], [0, 0, 1, 1], [], []>} : vector<2x64xf32>, vector<64x256xf32>, vector<2x256xf32> -> vector<2x256xf32>
    %94 = arith.addf %92, %93 : vector<2x256xf32>
    %95 = vector.extract_strided_slice %94 {offsets = [0, 0], sizes = [2, 192], strides = [1, 1]} : vector<2x256xf32> to vector<2x192xf32>
    %96 = arith.negf %95 : vector<2x192xf32>
    %97 = math.exp %96 : vector<2x192xf32>
    %cst_33 = arith.constant 1.000000e+00 : f32
    %98 = vector.broadcast %cst_33 : f32 to vector<2x192xf32>
    %99 = arith.addf %98, %97 : vector<2x192xf32>
    %100 = arith.divf %98, %99 : vector<2x192xf32>
    %101 = vector.extract_strided_slice %100 {offsets = [0, 0], sizes = [2, 64], strides = [1, 1]} : vector<2x192xf32> to vector<2x64xf32>
    %102 = vector.extract_strided_slice %100 {offsets = [0, 64], sizes = [2, 64], strides = [1, 1]} : vector<2x192xf32> to vector<2x64xf32>
    %103 = vector.extract_strided_slice %100 {offsets = [0, 128], sizes = [2, 64], strides = [1, 1]} : vector<2x192xf32> to vector<2x64xf32>
    %104 = vector.extract_strided_slice %94 {offsets = [0, 192], sizes = [2, 64], strides = [1, 1]} : vector<2x256xf32> to vector<2x64xf32>
    %105 = math.tanh %104 : vector<2x64xf32>
    %106 = arith.mulf %101, %90 : vector<2x64xf32>
    %107 = arith.mulf %102, %105 : vector<2x64xf32>
    %108 = arith.addf %106, %107 : vector<2x64xf32>
    %109 = math.tanh %108 : vector<2x64xf32>
    %110 = arith.mulf %103, %109 : vector<2x64xf32>
    %111 = vector.extract_strided_slice %88 {offsets = [1, 0, 0], sizes = [1, 2, 256], strides = [1, 1, 1]} : vector<8x2x256xf32> to vector<1x2x256xf32>
    %112 = vector.shape_cast %111 : vector<1x2x256xf32> to vector<2x256xf32>
    %cst_34 = arith.constant dense<0.000000e+00> : vector<2x256xf32>
    %113 = tpu.matmul %110, %78, %cst_34 {dimension_numbers = #tpu.dot_dimension_numbers<[1], [0], [0], [1], [0, 0, 1, 1], [], []>} : vector<2x64xf32>, vector<64x256xf32>, vector<2x256xf32> -> vector<2x256xf32>
    %114 = arith.addf %112, %113 : vector<2x256xf32>
    %115 = vector.extract_strided_slice %114 {offsets = [0, 0], sizes = [2, 192], strides = [1, 1]} : vector<2x256xf32> to vector<2x192xf32>
    %116 = arith.negf %115 : vector<2x192xf32>
    %117 = math.exp %116 : vector<2x192xf32>
    %cst_35 = arith.constant 1.000000e+00 : f32
    %118 = vector.broadcast %cst_35 : f32 to vector<2x192xf32>
    %119 = arith.addf %118, %117 : vector<2x192xf32>
    %120 = arith.divf %118, %119 : vector<2x192xf32>
    %121 = vector.extract_strided_slice %120 {offsets = [0, 0], sizes = [2, 64], strides = [1, 1]} : vector<2x192xf32> to vector<2x64xf32>
    %122 = vector.extract_strided_slice %120 {offsets = [0, 64], sizes = [2, 64], strides = [1, 1]} : vector<2x192xf32> to vector<2x64xf32>
    %123 = vector.extract_strided_slice %120 {offsets = [0, 128], sizes = [2, 64], strides = [1, 1]} : vector<2x192xf32> to vector<2x64xf32>
    %124 = vector.extract_strided_slice %114 {offsets = [0, 192], sizes = [2, 64], strides = [1, 1]} : vector<2x256xf32> to vector<2x64xf32>
    %125 = math.tanh %124 : vector<2x64xf32>
    %126 = arith.mulf %121, %108 : vector<2x64xf32>
    %127 = arith.mulf %122, %125 : vector<2x64xf32>
    %128 = arith.addf %126, %127 : vector<2x64xf32>
    %129 = math.tanh %128 : vector<2x64xf32>
    %130 = arith.mulf %123, %129 : vector<2x64xf32>
    %131 = vector.extract_strided_slice %88 {offsets = [2, 0, 0], sizes = [1, 2, 256], strides = [1, 1, 1]} : vector<8x2x256xf32> to vector<1x2x256xf32>
    %132 = vector.shape_cast %131 : vector<1x2x256xf32> to vector<2x256xf32>
    %cst_36 = arith.constant dense<0.000000e+00> : vector<2x256xf32>
    %133 = tpu.matmul %130, %78, %cst_36 {dimension_numbers = #tpu.dot_dimension_numbers<[1], [0], [0], [1], [0, 0, 1, 1], [], []>} : vector<2x64xf32>, vector<64x256xf32>, vector<2x256xf32> -> vector<2x256xf32>
    %134 = arith.addf %132, %133 : vector<2x256xf32>
    %135 = vector.extract_strided_slice %134 {offsets = [0, 0], sizes = [2, 192], strides = [1, 1]} : vector<2x256xf32> to vector<2x192xf32>
    %136 = arith.negf %135 : vector<2x192xf32>
    %137 = math.exp %136 : vector<2x192xf32>
    %cst_37 = arith.constant 1.000000e+00 : f32
    %138 = vector.broadcast %cst_37 : f32 to vector<2x192xf32>
    %139 = arith.addf %138, %137 : vector<2x192xf32>
    %140 = arith.divf %138, %139 : vector<2x192xf32>
    %141 = vector.extract_strided_slice %140 {offsets = [0, 0], sizes = [2, 64], strides = [1, 1]} : vector<2x192xf32> to vector<2x64xf32>
    %142 = vector.extract_strided_slice %140 {offsets = [0, 64], sizes = [2, 64], strides = [1, 1]} : vector<2x192xf32> to vector<2x64xf32>
    %143 = vector.extract_strided_slice %140 {offsets = [0, 128], sizes = [2, 64], strides = [1, 1]} : vector<2x192xf32> to vector<2x64xf32>
    %144 = vector.extract_strided_slice %134 {offsets = [0, 192], sizes = [2, 64], strides = [1, 1]} : vector<2x256xf32> to vector<2x64xf32>
    %145 = math.tanh %144 : vector<2x64xf32>
    %146 = arith.mulf %141, %128 : vector<2x64xf32>
    %147 = arith.mulf %142, %145 : vector<2x64xf32>
    %148 = arith.addf %146, %147 : vector<2x64xf32>
    %149 = math.tanh %148 : vector<2x64xf32>
    %150 = arith.mulf %143, %149 : vector<2x64xf32>
    %151 = vector.extract_strided_slice %88 {offsets = [3, 0, 0], sizes = [1, 2, 256], strides = [1, 1, 1]} : vector<8x2x256xf32> to vector<1x2x256xf32>
    %152 = vector.shape_cast %151 : vector<1x2x256xf32> to vector<2x256xf32>
    %cst_38 = arith.constant dense<0.000000e+00> : vector<2x256xf32>
    %153 = tpu.matmul %150, %78, %cst_38 {dimension_numbers = #tpu.dot_dimension_numbers<[1], [0], [0], [1], [0, 0, 1, 1], [], []>} : vector<2x64xf32>, vector<64x256xf32>, vector<2x256xf32> -> vector<2x256xf32>
    %154 = arith.addf %152, %153 : vector<2x256xf32>
    %155 = vector.extract_strided_slice %154 {offsets = [0, 0], sizes = [2, 192], strides = [1, 1]} : vector<2x256xf32> to vector<2x192xf32>
    %156 = arith.negf %155 : vector<2x192xf32>
    %157 = math.exp %156 : vector<2x192xf32>
    %cst_39 = arith.constant 1.000000e+00 : f32
    %158 = vector.broadcast %cst_39 : f32 to vector<2x192xf32>
    %159 = arith.addf %158, %157 : vector<2x192xf32>
    %160 = arith.divf %158, %159 : vector<2x192xf32>
    %161 = vector.extract_strided_slice %160 {offsets = [0, 0], sizes = [2, 64], strides = [1, 1]} : vector<2x192xf32> to vector<2x64xf32>
    %162 = vector.extract_strided_slice %160 {offsets = [0, 64], sizes = [2, 64], strides = [1, 1]} : vector<2x192xf32> to vector<2x64xf32>
    %163 = vector.extract_strided_slice %160 {offsets = [0, 128], sizes = [2, 64], strides = [1, 1]} : vector<2x192xf32> to vector<2x64xf32>
    %164 = vector.extract_strided_slice %154 {offsets = [0, 192], sizes = [2, 64], strides = [1, 1]} : vector<2x256xf32> to vector<2x64xf32>
    %165 = math.tanh %164 : vector<2x64xf32>
    %166 = arith.mulf %161, %148 : vector<2x64xf32>
    %167 = arith.mulf %162, %165 : vector<2x64xf32>
    %168 = arith.addf %166, %167 : vector<2x64xf32>
    %169 = math.tanh %168 : vector<2x64xf32>
    %170 = arith.mulf %163, %169 : vector<2x64xf32>
    %171 = vector.extract_strided_slice %88 {offsets = [4, 0, 0], sizes = [1, 2, 256], strides = [1, 1, 1]} : vector<8x2x256xf32> to vector<1x2x256xf32>
    %172 = vector.shape_cast %171 : vector<1x2x256xf32> to vector<2x256xf32>
    %cst_40 = arith.constant dense<0.000000e+00> : vector<2x256xf32>
    %173 = tpu.matmul %170, %78, %cst_40 {dimension_numbers = #tpu.dot_dimension_numbers<[1], [0], [0], [1], [0, 0, 1, 1], [], []>} : vector<2x64xf32>, vector<64x256xf32>, vector<2x256xf32> -> vector<2x256xf32>
    %174 = arith.addf %172, %173 : vector<2x256xf32>
    %175 = vector.extract_strided_slice %174 {offsets = [0, 0], sizes = [2, 192], strides = [1, 1]} : vector<2x256xf32> to vector<2x192xf32>
    %176 = arith.negf %175 : vector<2x192xf32>
    %177 = math.exp %176 : vector<2x192xf32>
    %cst_41 = arith.constant 1.000000e+00 : f32
    %178 = vector.broadcast %cst_41 : f32 to vector<2x192xf32>
    %179 = arith.addf %178, %177 : vector<2x192xf32>
    %180 = arith.divf %178, %179 : vector<2x192xf32>
    %181 = vector.extract_strided_slice %180 {offsets = [0, 0], sizes = [2, 64], strides = [1, 1]} : vector<2x192xf32> to vector<2x64xf32>
    %182 = vector.extract_strided_slice %180 {offsets = [0, 64], sizes = [2, 64], strides = [1, 1]} : vector<2x192xf32> to vector<2x64xf32>
    %183 = vector.extract_strided_slice %180 {offsets = [0, 128], sizes = [2, 64], strides = [1, 1]} : vector<2x192xf32> to vector<2x64xf32>
    %184 = vector.extract_strided_slice %174 {offsets = [0, 192], sizes = [2, 64], strides = [1, 1]} : vector<2x256xf32> to vector<2x64xf32>
    %185 = math.tanh %184 : vector<2x64xf32>
    %186 = arith.mulf %181, %168 : vector<2x64xf32>
    %187 = arith.mulf %182, %185 : vector<2x64xf32>
    %188 = arith.addf %186, %187 : vector<2x64xf32>
    %189 = math.tanh %188 : vector<2x64xf32>
    %190 = arith.mulf %183, %189 : vector<2x64xf32>
    %191 = vector.extract_strided_slice %88 {offsets = [5, 0, 0], sizes = [1, 2, 256], strides = [1, 1, 1]} : vector<8x2x256xf32> to vector<1x2x256xf32>
    %192 = vector.shape_cast %191 : vector<1x2x256xf32> to vector<2x256xf32>
    %cst_42 = arith.constant dense<0.000000e+00> : vector<2x256xf32>
    %193 = tpu.matmul %190, %78, %cst_42 {dimension_numbers = #tpu.dot_dimension_numbers<[1], [0], [0], [1], [0, 0, 1, 1], [], []>} : vector<2x64xf32>, vector<64x256xf32>, vector<2x256xf32> -> vector<2x256xf32>
    %194 = arith.addf %192, %193 : vector<2x256xf32>
    %195 = vector.extract_strided_slice %194 {offsets = [0, 0], sizes = [2, 192], strides = [1, 1]} : vector<2x256xf32> to vector<2x192xf32>
    %196 = arith.negf %195 : vector<2x192xf32>
    %197 = math.exp %196 : vector<2x192xf32>
    %cst_43 = arith.constant 1.000000e+00 : f32
    %198 = vector.broadcast %cst_43 : f32 to vector<2x192xf32>
    %199 = arith.addf %198, %197 : vector<2x192xf32>
    %200 = arith.divf %198, %199 : vector<2x192xf32>
    %201 = vector.extract_strided_slice %200 {offsets = [0, 0], sizes = [2, 64], strides = [1, 1]} : vector<2x192xf32> to vector<2x64xf32>
    %202 = vector.extract_strided_slice %200 {offsets = [0, 64], sizes = [2, 64], strides = [1, 1]} : vector<2x192xf32> to vector<2x64xf32>
    %203 = vector.extract_strided_slice %200 {offsets = [0, 128], sizes = [2, 64], strides = [1, 1]} : vector<2x192xf32> to vector<2x64xf32>
    %204 = vector.extract_strided_slice %194 {offsets = [0, 192], sizes = [2, 64], strides = [1, 1]} : vector<2x256xf32> to vector<2x64xf32>
    %205 = math.tanh %204 : vector<2x64xf32>
    %206 = arith.mulf %201, %188 : vector<2x64xf32>
    %207 = arith.mulf %202, %205 : vector<2x64xf32>
    %208 = arith.addf %206, %207 : vector<2x64xf32>
    %209 = math.tanh %208 : vector<2x64xf32>
    %210 = arith.mulf %203, %209 : vector<2x64xf32>
    %211 = vector.extract_strided_slice %88 {offsets = [6, 0, 0], sizes = [1, 2, 256], strides = [1, 1, 1]} : vector<8x2x256xf32> to vector<1x2x256xf32>
    %212 = vector.shape_cast %211 : vector<1x2x256xf32> to vector<2x256xf32>
    %cst_44 = arith.constant dense<0.000000e+00> : vector<2x256xf32>
    %213 = tpu.matmul %210, %78, %cst_44 {dimension_numbers = #tpu.dot_dimension_numbers<[1], [0], [0], [1], [0, 0, 1, 1], [], []>} : vector<2x64xf32>, vector<64x256xf32>, vector<2x256xf32> -> vector<2x256xf32>
    %214 = arith.addf %212, %213 : vector<2x256xf32>
    %215 = vector.extract_strided_slice %214 {offsets = [0, 0], sizes = [2, 192], strides = [1, 1]} : vector<2x256xf32> to vector<2x192xf32>
    %216 = arith.negf %215 : vector<2x192xf32>
    %217 = math.exp %216 : vector<2x192xf32>
    %cst_45 = arith.constant 1.000000e+00 : f32
    %218 = vector.broadcast %cst_45 : f32 to vector<2x192xf32>
    %219 = arith.addf %218, %217 : vector<2x192xf32>
    %220 = arith.divf %218, %219 : vector<2x192xf32>
    %221 = vector.extract_strided_slice %220 {offsets = [0, 0], sizes = [2, 64], strides = [1, 1]} : vector<2x192xf32> to vector<2x64xf32>
    %222 = vector.extract_strided_slice %220 {offsets = [0, 64], sizes = [2, 64], strides = [1, 1]} : vector<2x192xf32> to vector<2x64xf32>
    %223 = vector.extract_strided_slice %220 {offsets = [0, 128], sizes = [2, 64], strides = [1, 1]} : vector<2x192xf32> to vector<2x64xf32>
    %224 = vector.extract_strided_slice %214 {offsets = [0, 192], sizes = [2, 64], strides = [1, 1]} : vector<2x256xf32> to vector<2x64xf32>
    %225 = math.tanh %224 : vector<2x64xf32>
    %226 = arith.mulf %221, %208 : vector<2x64xf32>
    %227 = arith.mulf %222, %225 : vector<2x64xf32>
    %228 = arith.addf %226, %227 : vector<2x64xf32>
    %229 = math.tanh %228 : vector<2x64xf32>
    %230 = arith.mulf %223, %229 : vector<2x64xf32>
    %231 = vector.extract_strided_slice %88 {offsets = [7, 0, 0], sizes = [1, 2, 256], strides = [1, 1, 1]} : vector<8x2x256xf32> to vector<1x2x256xf32>
    %232 = vector.shape_cast %231 : vector<1x2x256xf32> to vector<2x256xf32>
    %cst_46 = arith.constant dense<0.000000e+00> : vector<2x256xf32>
    %233 = tpu.matmul %230, %78, %cst_46 {dimension_numbers = #tpu.dot_dimension_numbers<[1], [0], [0], [1], [0, 0, 1, 1], [], []>} : vector<2x64xf32>, vector<64x256xf32>, vector<2x256xf32> -> vector<2x256xf32>
    %234 = arith.addf %232, %233 : vector<2x256xf32>
    %235 = vector.extract_strided_slice %234 {offsets = [0, 0], sizes = [2, 192], strides = [1, 1]} : vector<2x256xf32> to vector<2x192xf32>
    %236 = arith.negf %235 : vector<2x192xf32>
    %237 = math.exp %236 : vector<2x192xf32>
    %cst_47 = arith.constant 1.000000e+00 : f32
    %238 = vector.broadcast %cst_47 : f32 to vector<2x192xf32>
    %239 = arith.addf %238, %237 : vector<2x192xf32>
    %240 = arith.divf %238, %239 : vector<2x192xf32>
    %241 = vector.extract_strided_slice %240 {offsets = [0, 0], sizes = [2, 64], strides = [1, 1]} : vector<2x192xf32> to vector<2x64xf32>
    %242 = vector.extract_strided_slice %240 {offsets = [0, 64], sizes = [2, 64], strides = [1, 1]} : vector<2x192xf32> to vector<2x64xf32>
    %243 = vector.extract_strided_slice %240 {offsets = [0, 128], sizes = [2, 64], strides = [1, 1]} : vector<2x192xf32> to vector<2x64xf32>
    %244 = vector.extract_strided_slice %234 {offsets = [0, 192], sizes = [2, 64], strides = [1, 1]} : vector<2x256xf32> to vector<2x64xf32>
    %245 = math.tanh %244 : vector<2x64xf32>
    %246 = arith.mulf %241, %228 : vector<2x64xf32>
    %247 = arith.mulf %242, %245 : vector<2x64xf32>
    %248 = arith.addf %246, %247 : vector<2x64xf32>
    %249 = math.tanh %248 : vector<2x64xf32>
    %250 = arith.mulf %243, %249 : vector<2x64xf32>
    %c0_48 = arith.constant 0 : index
    %c0_49 = arith.constant 0 : index
    %251 = vector.load %arg7[%c0_48, %c0_49] : memref<2x64xf32, #tpu.memory_space<vmem>>, vector<2x64xf32>
    tpu.vector_store %arg7[%c0_48, %c0_49], %250 {strides = array<i32>} : memref<2x64xf32, #tpu.memory_space<vmem>>, vector<2x64xf32>,
    return
  }
}

</mosaic_0001>

<bundles_post_ra>
// kernel: combined_forward.1
= control target key start
LH: loop header
LB: loop body
LE: loop exit
PB: predicated region body
PF: predicated region fallthrough
CT: control target
= control target key end

     0   :  { %13 = vsyncpa [#allocation3], 0  ;;  %s2449_s0 = inlined_call_operand.vmem [shape: f32[16,8], index: 0, kind: input, shape index: {}]   ;;  %s2450_s1 = inlined_call_operand.vmem [shape: f32[56,4], index: 1, kind: input, shape index: {}]   ;;  %s2451_s2 = inlined_call_operand.vmem [shape: s32[2,56], index: 2, kind: input, shape index: {}]   ;;  %s2452_s3 = inlined_call_operand.vmem [shape: f32[16,32], index: 3, kind: input, shape index: {}]   ;;  %s2453_s4 = inlined_call_operand.vmem [shape: f32[8,2,1], index: 4, kind: input, shape index: {}]   ;;  %s2454_s5 = inlined_call_operand.hbm [shape: f32[66,256], index: 5, kind: input, shape index: {}]   ;;  %s2455_s6 = inlined_call_operand.hbm [shape: f32[16,32], index: 6, kind: output, shape index: {0}]   ;;  %s2456_s7 = inlined_call_operand.hbm [shape: f32[2,64], index: 7, kind: output, shape index: {1}]  }
   0x1   :  { %14 = vsyncpa [#allocation4], 0 }
   0x2   :  { %15 = vsyncpa [#allocation7], 0  ;;  %s2060_s24 = smov [#allocation2]   ;;  %s1988_s28 = scalar_lea.hbm %s2454_s5, 2304 }
   0x3   :  { %s31_s25 = sshll.u32 %s2060_s24, 4  ;;  %p1989_p0 = scmp.ne.s32.totalorder %s2454_s5, %s1988_s28  ;;  %s32_s25 = int_to_ptr.vmem [resolvable:$true] %s31_s25 }
   0x4   :  { %p1992_p1 = scmp.lt.u32.totalorder %s1988_s28, %s2454_s5 }
   0x6   :  { %p1994_p2 = pnand %p1992_p1, %p1989_p0 }
   0x8   :  { %1997 = shalt.err (!%p1994_p2)
}
   0x9   :  { %s1998_s10 = scalar_lea.vmem %s32_s25, 2304  ;;  %p2003_p4 = scmp.lt.s32.totalorder %s32_s25, %s32_s25 }
   0xa   :  { %p1999_p3 = scmp.ne.s32.totalorder %s32_s25, %s1998_s10  ;;  %p2004_p5 = scmp.lt.s32.totalorder %s1998_s10, %s1998_s10 }
   0xc   :  { %p2005_p6 = por %p2004_p5, %p2003_p4 }
   0xe   :  { %p2006_p7 = pnand %p2005_p6, %p1999_p3 }
  0x10   :  { %2009 = shalt.err (!%p2006_p7)
}
  0x11   :  { %s2061_s11 = smov 256   ;;  %s2062_s12 = smov 16  }
  0x12   :  { %37 = dma.hbm_to_vmem [thread:$0]  %s2454_s5, 2304, %s32_s25, [#allocation3], %s2061_s11, %s2061_s11, %s2062_s12  }
  0x13   :  { %2054 = dma.done.wait [#allocation3], 2304  }
  0x14   :  { %2055 = vsyncadd [#allocation3], 4294964992  ;;  %v2063_v0 = vmov 0.0   ;;  %vm2064_vm0 = vmmov 0   ;;  %vm181_vm1 = vcmask 1043456   ;;  %vm159_vm2 = vcmask 31744  }
  0x15   :  { %1693 = vmatprep.subr.mxu1 %v2063_v0  ;;  %1695 = vmatprep.mubr.msk.f32.mxu1 %vm2064_vm0, %v2063_v0  ;;  %v2129_v1 = vld [vmem:[%s2452_s3 + $0x8] sm:$0xff]  ;;  %v152_v2 = vld [vmem:[%s2450_s1] sm:$0xff]  ;;  %v154_v4 = vld [vmem:[%s2450_s1 + $0x10] sm:$0xff]  ;;  %vm45_vm3 = vcmask 64512   ;;  %v127_v12 = vlaneseq  ;;  %vm133_vm4 = vcmask 261120   ;;  %vm437_vm7 = vcmask 457728  }
  0x16   :  { %1694 = vmatpush3.msk.msra.mxu1 %vm181_vm1, %v2129_v1  ;;  %v153_v3 = vld [vmem:[%s2450_s1 + $0x8] sm:$0xff]  ;;  %v155_v5 = vld [vmem:[%s2450_s1 + $0x18] sm:$0xff]  ;;  %v156_v6 = vld [vmem:[%s2450_s1 + $0x20] sm:$0xff]  ;;  %vm369_vm11 = vcmask 130112   ;;  %vm376_vm12 = vcmask 195712   ;;  %vm383_vm13 = vcmask 261312  }
  0x17   :  { %1696 = vmatmul.mubr.msk.f32.vlgmr.msra.gmra.mrb[0].mxu1 %vm159_vm2, %v152_v2  ;;  %v157_v7 = vld [vmem:[%s2450_s1 + $0x28] sm:$0xff]  ;;  %v158_v8 = vld [vmem:[%s2450_s1 + $0x30] sm:$0xff]  ;;  %v41_v9 = vld [vmem:[%s2452_s3] sm:$0xff]  ;;  %v2183_v13 = vshrl.u32 %v127_v12, 7  ;;  %vm390_vm14 = vcmask 326912   ;;  %vm404_vm1 = vcmask 458112  }
  0x18   :  { %1698 = vmatprep.mubr.msk.f32.mxu1 %vm2064_vm0, %v2063_v0  ;;  %v43_v10 = vld [vmem:[%s2449_s0] sm:$0xff]  ;;  %1688 = vmatprep.subr.mxu0 %v41_v9  ;;  %v44_v11 = vld [vmem:[%s2449_s0 + $0x8] sm:$0xff]  ;;  %vm1734_vm8 = vmpackc.low %vm437_vm7, %vm437_vm7  ;;  %s2066_s17 = smov 64  }
  0x19   :  { %1690 = vmatprep.mubr.msk.f32.mxu0 %vm45_vm3, %v43_v10  ;;  %1689 = vmatpush3.msra.mxu0 %v41_v9  ;;  %v287_v14 = vsub.s32 6, %v2183_v13  ;;  %v321_v44 = vadd.s32 8, %v2183_v13  ;;  %v1633_v45 = vld [vmem:[%s2451_s2] ss:$0 sm:$0xff]  ;;  %v2206_v49 = vld [vmem:[%s2451_s2 + $0x1] ss:$0 sm:$0xff] }
  0x1a   :  { %1691 = vmatmul.mubr.msk.f32.vlgmr.msra.gmra.mrb[0].mxu0 %vm45_vm3, %v44_v11  ;;  %vm431_vm5 = vcmp.eq.s32.totalorder %v1633_v45, %v2183_v13  ;;  %vm339_vm9 = vcmp.eq.s32.totalorder %v2206_v49, %v2183_v13  ;;  %v684_v52 = vld [vmem:[#allocation2 + $0x8] sm:$0xff]  ;;  %v686_v53 = vld [vmem:[#allocation2 + $0x18] sm:$0xff]  ;;  %v683_v54 = vld [vmem:[#allocation2] sm:$0xff]  ;;  %vm573_vm3 = vcmask 130048  }
  0x1b   :  { %1699 = vmatmul.mubr.msk.f32.gmra.mrb[2].mxu1 %vm159_vm2, %v153_v3  ;;  %v288_v15 = vrot.slane %v2129_v1, %v287_v14  ;;  %vm432_vm6 = vcmp.eq.s32.totalorder %v1633_v45, %v321_v44  ;;  %v1634_v46 = vsel %vm431_vm5, 1.0, %v2063_v0  ;;  %v2211_v50 = vsel %vm339_vm9, 1.0, %v2063_v0  ;;  %v685_v56 = vld [vmem:[#allocation2 + $0x10] sm:$0xff]  ;;  %v688_v57 = vld [vmem:[#allocation2 + $0x28] sm:$0xff]  ;;  %v690_v58 = vld [vmem:[#allocation2 + $0x38] sm:$0xff] }
  0x1c   :  { %1701 = vmatprep.mubr.msk.f32.mxu1 %vm2064_vm0, %v2063_v0  ;;  %v1635_v47 = vsel %vm432_vm6, 1.0, %v2063_v0  ;;  %vm340_vm10 = vcmp.eq.s32.totalorder %v2206_v49, %v321_v44  ;;  %1720 = vmatprep.mubr.msk.f32.mxu0 %vm437_vm7, %v2211_v50  ;;  %v2218_v55 = vpack.c.bf16 %v686_v53, %v684_v52  ;;  %v2220_v59 = vpack.c.bf16 %v685_v56, %v683_v54  ;;  %v687_v61 = vld [vmem:[#allocation2 + $0x20] sm:$0xff]  ;;  %v689_v62 = vld [vmem:[#allocation2 + $0x30] sm:$0xff]  ;;  %v692_v63 = vld [vmem:[#allocation2 + $0x48] sm:$0xff] }
  0x1d   :  { %v1733_v48 = vpack.c.bf16 %v1635_v47, %v1634_v46  ;;  %v1630_v51 = vsel %vm340_vm10, 1.0, %v2063_v0  ;;  %v2222_v60 = vpack.c.bf16 %v690_v58, %v688_v57  ;;  %v694_v2 = vld [vmem:[#allocation2 + $0x58] sm:$0xff]  ;;  %v2226_v3 = vpack.c.bf16 %v689_v62, %v687_v61  ;;  %v695_v11 = vld [vmem:[#allocation2 + $0x60] sm:$0xff]  ;;  %v697_v14 = vld [vmem:[#allocation2 + $0x70] sm:$0xff] }
  0x1e   :  { %1744 = vmatprep.subr.bf16.mxu1 %v2218_v55 }
  0x1f   :  { %1702 = vmatmul.mubr.msk.f32.gmra.mrb[4].mxu1 %vm159_vm2, %v154_v4  ;;  %1735 = vmatprep.subr.msk.bf16.mxu0 %vm1734_vm8, %v1733_v48  ;;  %v2229_v4 = vpack.c.bf16 %v694_v2, %v692_v63 }
  0x20   :  { %1704 = vmatprep.mubr.msk.f32.mxu1 %vm2064_vm0, %v2063_v0  ;;  %1738 = vmatpush3.bf16.xpose.msk.msra.mxu0 %vm1734_vm8, %v1733_v48  ;;  %vm797_vm8 = vcmask 523264  }
  0x21   :  { %1746 = vmatpush1.bf16.msra.mxu1 %v2220_v59 }
  0x22   :  { %1748 = vmatprep.subr.bf16.mxu1 %v2222_v60 }
  0x23   :  { %1705 = vmatmul.mubr.msk.f32.gmra.mrb[6].mxu1 %vm159_vm2, %v155_v5  ;;  %v691_v5 = vld [vmem:[#allocation2 + $0x40] sm:$0xff] }
  0x24   :  { %1707 = vmatprep.mubr.msk.f32.mxu1 %vm2064_vm0, %v2063_v0 }
  0x25   :  { %1750 = vmatpush1.bf16.msra.mxu1 %v2226_v3 }
  0x26   :  { %1752 = vmatprep.subr.bf16.mxu1 %v2229_v4 }
  0x27   :  { %1708 = vmatmul.mubr.msk.f32.gmra.mrb[8].mxu1 %vm159_vm2, %v156_v6  ;;  %1721 = vmatmul.mubr.msk.f32.vlgmr.msra.gmra.mrb[2].mxu0 %vm437_vm7, %v1630_v51  ;;  %v693_v6 = vld [vmem:[#allocation2 + $0x50] sm:$0xff] }
  0x28   :  { %1710 = vmatprep.mubr.msk.f32.mxu1 %vm2064_vm0, %v2063_v0  ;;  %v2232_v9 = vpack.c.bf16 %v693_v6, %v691_v5 }
  0x2a   :  { %1754 = vmatpush1.bf16.msra.mxu1 %v2232_v9 }
  0x2b   :  { %1711 = vmatmul.mubr.msk.f32.gmra.mrb[10].mxu1 %vm159_vm2, %v157_v7  ;;  %v696_v7 = vld [vmem:[#allocation2 + $0x68] sm:$0xff] }
  0x2c   :  { %1713 = vmatprep.mubr.msk.f32.mxu1 %vm2064_vm0, %v2063_v0  ;;  %vm397_vm0 = vcmask 392512  }
  0x2f   :  { %1714 = vmatmul.mubr.msk.f32.gmra.mrb[12].mxu1 %vm159_vm2, %v158_v8  ;;  %v698_v8 = vld [vmem:[#allocation2 + $0x78] sm:$0xff] }
  0x30   :  { %865 = vmatprep.mubr.f32.mxu1 %v2063_v0  ;;  %v2235_v10 = vpack.c.bf16 %v698_v8, %v696_v7 }
  0x32   :  { %1756 = vmatprep.subr.bf16.mxu1 %v2235_v10 }
  0xea   :  { %v251_v16 = vpop.f32.mrb[0].mxu1 }
  0xeb   :  { %v289_v17 = vmul.f32 %v288_v15, %v251_v16  ;;  %v1697_v18 = vpop.f32.mrb[1].mxu1  ;;  %v142_v16 = vsub.s32 4, %v2183_v13 }
  0xed   :  { %v296_v19 = vsel %vm133_vm4, %v289_v17, 0.0  ;;  %v129_v17 = vsub.s32 5, %v2183_v13  ;;  %v143_v18 = vrot.slane %v2129_v1, %v142_v16 }
  0xee   :  { %297 = vadd.xlane.f32.xlu0 %v296_v19  ;;  %v256_v20 = vpop.f32.mrb[2].mxu1 }
  0xef   :  { %v290_v21 = vmul.f32 %v288_v15, %v256_v20  ;;  %v1700_v22 = vpop.f32.mrb[3].mxu1  ;;  %v130_v19 = vrot.slane %v2129_v1, %v129_v17  ;;  %v1692_v20 = vpop.f32.mrb[0].mxu0 }
  0xf0   :  { %v145_v22 = vmul.f32 %v1692_v20, %v143_v18 }
  0xf1   :  { %v299_v23 = vsel %vm133_vm4, %v290_v21, 0.0  ;;  %v118_v21 = vpop.f32.mrb[1].mxu0 }
  0xf2   :  { %300 = vadd.xlane.f32.xlu0 %v299_v23  ;;  %v261_v24 = vpop.f32.mrb[4].mxu1  ;;  %v132_v23 = vmul.f32 %v1692_v20, %v130_v19 }
  0xf3   :  { %v291_v25 = vmul.f32 %v288_v15, %v261_v24  ;;  %v1703_v26 = vpop.f32.mrb[5].mxu1  ;;  %v1739_v24 = vpack.c.bf16 %v1692_v20, %v118_v21  ;;  %v2065_v20 = vmov 0  }
  0xf4   :  { %v131_v26 = vmul.f32 %v130_v19, %v118_v21  ;;  %1882 = vset.pattern.permute.xlu1 %v2065_v20  ;;  %1883 = vset.pattern.permute.xlu0 %v2065_v20 }
  0xf5   :  { %v302_v27 = vsel %vm133_vm4, %v291_v25, 0.0  ;;  %v144_v25 = vmul.f32 %v143_v18, %v118_v21  ;;  %1740 = vmatprep.subr.bf16.mxu0 %v1739_v24 }
  0xf6   :  { %303 = vadd.xlane.f32.xlu1 %v302_v27  ;;  %v266_v28 = vpop.f32.mrb[6].mxu1  ;;  %v149_v27 = vsel %vm133_vm4, %v145_v22, 0.0  ;;  %1742 = vmatpush3.bf16.msra.mxu0 %v1739_v24 }
  0xf7   :  { %v292_v29 = vmul.f32 %v288_v15, %v266_v28  ;;  %v1706_v30 = vpop.f32.mrb[7].mxu1  ;;  %v146_v28 = vsel %vm133_vm4, %v144_v25, 0.0  ;;  %1760 = vmatprep.subr.bf16.mxu0 %v2218_v55 }
  0xf8   :  { %v134_v30 = vsel %vm133_vm4, %v131_v26, 0.0 }
  0xf9   :  { %v305_v31 = vsel %vm133_vm4, %v292_v29, 0.0  ;;  %v137_v29 = vsel %vm133_vm4, %v132_v23, 0.0 }
  0xfa   :  { %306 = vadd.xlane.f32.xlu1 %v305_v31  ;;  %v271_v32 = vpop.f32.mrb[8].mxu1  ;;  %v359_v31 = vand.u32 127, %v127_v12  ;;  %v1722_v19 = vpop.f32.mrb[2].mxu0 }
  0xfb   :  { %v293_v33 = vmul.f32 %v288_v15, %v271_v32  ;;  %v1709_v34 = vpop.f32.mrb[9].mxu1  ;;  %vm570_vm6 = vcmp.gt.f32.partialorder %v1722_v19, 0.0 }
  0xfc   :  { %v399_v46 = vadd.s32 4294967248, %v359_v31 }
  0xfd   :  { %v308_v35 = vsel %vm133_vm4, %v293_v33, 0.0  ;;  %v364_v33 = vadd.s32 4294967288, %v359_v31 }
  0xfe   :  { %309 = vadd.xlane.f32.xlu0 %v308_v35  ;;  %v276_v36 = vpop.f32.mrb[10].mxu1  ;;  %v371_v35 = vadd.s32 4294967280, %v359_v31  ;;  %v402_v61 = vsub.s32 %v399_v46, %v2183_v13 }
  0xff   :  { %v294_v37 = vmul.f32 %v288_v15, %v276_v36  ;;  %v1712_v38 = vpop.f32.mrb[11].mxu1  ;;  %v378_v36 = vadd.s32 4294967272, %v359_v31 }
 0x100   :  { %v367_v38 = vsub.s32 %v364_v33, %v2183_v13 }
 0x101   :  { %v311_v39 = vsel %vm133_vm4, %v294_v37, 0.0  ;;  %v385_v37 = vadd.s32 4294967264, %v359_v31  ;;  %v381_v44 = vsub.s32 %v378_v36, %v2183_v13 }
 0x102   :  { %312 = vadd.xlane.f32.xlu1 %v311_v39  ;;  %v281_v40 = vpop.f32.mrb[12].mxu1 }
 0x103   :  { %v295_v41 = vmul.f32 %v288_v15, %v281_v40  ;;  %v1715_v42 = vpop.f32.mrb[13].mxu1  ;;  %v2238_v15 = vpack.c.bf16 %v697_v14, %v695_v11  ;;  %v392_v40 = vadd.s32 4294967256, %v359_v31  ;;  %v388_v12 = vsub.s32 %v385_v37, %v2183_v13 }
 0x104   :  { %v374_v42 = vsub.s32 %v371_v35, %v2183_v13 }
 0x105   :  { %v314_v43 = vsel %vm133_vm4, %v295_v41, 0.0  ;;  %1758 = vmatpush1.bf16.msra.mxu1 %v2238_v15  ;;  %v323_v41 = vadd.s32 24, %v2183_v13  ;;  %v395_v51 = vsub.s32 %v392_v40, %v2183_v13 }
 0x106   :  { %315 = vadd.xlane.f32.xlu0 %v314_v43  ;;  %1776 = vmatprep.subr.bf16.mxu1 %v2218_v55  ;;  %v362_v43 = vsub.s32 %v359_v31, %v2183_v13 }
 0x107   :  { %147 = vadd.xlane.f32.xlu1 %v146_v28  ;;  %v1627_v52 = vadd.s32 4294967280, %v323_v41  ;;  %v701_v41 = vld [vmem:[%s2453_s4] sm:$0x3] }
 0x108   :  { %866 = vmatmul.mubr.f32.vlgmr.msra.gmra.mrb[14].mxu1 %v2063_v0 }
 0x109   :  { %1778 = vmatpush1.bf16.msra.mxu1 %v2220_v59  ;;  %1061 = vmatprep.mubr.f32.mxu1 %v2063_v0  ;;  %vm342_vm15 = vcmp.eq.s32.totalorder %v2206_v49, %v1627_v52  ;;  %v522_v49 = vpop.f32.mrb[3].mxu0 }
 0x10a   :  { %1780 = vmatprep.subr.bf16.mxu1 %v2222_v60  ;;  %150 = vadd.xlane.f32.xlu0 %v149_v27  ;;  %v1632_v8 = vsel %vm342_vm15, 1.0, %v2063_v0 }
 0x10b   :  { %135 = vadd.xlane.f32.xlu1 %v134_v30 }
 0x10d   :  { %1782 = vmatpush1.bf16.msra.mxu1 %v2226_v3 }
 0x10e   :  { %1784 = vmatprep.subr.bf16.mxu1 %v2229_v4  ;;  %138 = vadd.xlane.f32.xlu0 %v137_v29 }
 0x111   :  { %1786 = vmatpush1.bf16.msra.mxu1 %v2232_v9 }
 0x112   :  { %1788 = vmatprep.subr.bf16.mxu1 %v2235_v10 }
 0x115   :  { %1790 = vmatpush1.bf16.msra.mxu1 %v2238_v15 }
 0x116   :  { %1808 = vmatprep.subr.bf16.mxu1 %v2218_v55 }
 0x17b   :  { %v298_v32 = vpop.xlane.xlu0 %297 }
 0x17c   :  { %v363_v54 = vrot.slane %v298_v32, %v362_v43 }
 0x17f   :  { %v301_v39 = vpop.xlane.xlu0 %300 }
 0x180   :  { %v368_v47 = vrot.slane %v301_v39, %v367_v38 }
 0x182   :  { %v370_v62 = vsel %vm369_vm11, %v368_v47, %v363_v54  ;;  %v775_v47 = vsub.s32 1, %v2183_v13 }
 0x183   :  { %v304_v34 = vpop.xlane.xlu1 %303 }
 0x184   :  { %v375_v53 = vrot.slane %v304_v34, %v374_v42  ;;  %v702_v42 = vld [vmem:[%s2453_s4 + $0x2] sm:$0x3] }
 0x186   :  { %v377_v2 = vsel %vm376_vm12, %v375_v53, %v370_v62 }
 0x187   :  { %v307_v45 = vpop.xlane.xlu1 %306 }
 0x188   :  { %v382_v56 = vrot.slane %v307_v45, %v381_v44  ;;  %v751_v45 = vsub.s32 0, %v2183_v13 }
 0x18a   :  { %v384_v5 = vsel %vm383_vm13, %v382_v56, %v377_v2 }
 0x18b   :  { %v310_v48 = vpop.xlane.xlu0 %309 }
 0x18c   :  { %v389_v58 = vrot.slane %v310_v48, %v388_v12  ;;  %v699_v12 = vld [vmem:[#allocation2 + $0x80] sm:$0x3] }
 0x18d   :  { %v2288_v53 = vrot.slane %v699_v12, %v751_v45 }
 0x18e   :  { %v391_v7 = vsel %vm390_vm14, %v389_v58, %v384_v5 }
 0x18f   :  { %v313_v57 = vpop.xlane.xlu1 %312 }
 0x190   :  { %v396_v63 = vrot.slane %v313_v57, %v395_v51  ;;  %v2290_v57 = vrot.slane %v699_v12, %v775_v47 }
 0x192   :  { %v398_v14 = vsel %vm397_vm0, %v396_v63, %v391_v7 }
 0x193   :  { %v316_v6 = vpop.xlane.xlu0 %315 }
 0x194   :  { %v403_v11 = vrot.slane %v316_v6, %v402_v61  ;;  %v148_v22 = vpop.xlane.xlu1 %147  ;;  %v700_v61 = vld [vmem:[#allocation2 + $0x88] sm:$0x3] }
 0x195   :  { %v546_v24 = vrot.slane %v148_v22, %v362_v43  ;;  %v2294_v2 = vrot.slane %v700_v61, %v751_v45 }
 0x196   :  { %v405_v16 = vsel %vm404_vm1, %v403_v11, %v398_v14 }
 0x197   :  { %v426_v17 = vmul.f32 %v1632_v8, %v405_v16  ;;  %v425_v18 = vmul.f32 %v2211_v50, %v405_v16  ;;  %v151_v21 = vpop.xlane.xlu0 %150  ;;  %v2297_v8 = vrot.slane %v700_v61, %v775_v47 }
 0x198   :  { %v550_v23 = vrot.slane %v151_v21, %v367_v38  ;;  %v136_v27 = vpop.xlane.xlu1 %135 }
 0x199   :  { %1723 = vmatprep.mubr.msk.f32.mxu0 %vm437_vm7, %v425_v18 }
 0x19a   :  { %1724 = vmatmul.mubr.msk.f32.gmra.mrb[4].mxu0 %vm437_vm7, %v426_v17  ;;  %v551_v26 = vsel %vm369_vm11, %v550_v23, %v546_v24  ;;  %vm569_vm7 = vcmp.gt.f32.partialorder %v522_v49, 0.0 }
 0x19b   :  { %v139_v25 = vpop.xlane.xlu0 %138  ;;  %v559_v29 = vadd.f32 %v551_v26, %v136_v27 }
 0x19c   :  { %v560_v28 = vadd.f32 %v551_v26, %v139_v25 }
 0x1db   :  { %v867_v43 = vpop.f32.mrb[14].mxu1 }
 0x1dc   :  { %v869_v44 = vpop.f32.mrb[15].mxu1 }
 0x26d   :  { %v1725_v50 = vpop.f32.mrb[4].mxu0 }
 0x26e   :  { %v562_v30 = vadd.f32 %v1725_v50, %v560_v28  ;;  %v532_v31 = vpop.f32.mrb[5].mxu0 }
 0x26f   :  { %v561_v32 = vadd.f32 %v559_v29, %v532_v31 }
 0x270   :  { %v566_v33 = vmul.f32 0.2, %v562_v30  ;;  %vm564_vm2 = vcmp.gt.f32.partialorder %v562_v30, 0.0 }
 0x271   :  { %v565_v34 = vmul.f32 0.2, %v561_v32  ;;  %vm563_vm5 = vcmp.gt.f32.partialorder %v561_v32, 0.0 }
 0x272   :  { %v568_v35 = vsel %vm564_vm2, %v562_v30, %v566_v33 }
 0x273   :  { %v572_v36 = vsel %vm570_vm6, %v568_v35, -1e+09  ;;  %v567_v37 = vsel %vm563_vm5, %v561_v32, %v565_v34 }
 0x274   :  { %v577_v38 = vsel %vm573_vm3, %v572_v36, -inf  ;;  %v571_v39 = vsel %vm569_vm7, %v567_v37, -1e+09 }
 0x275   :  { %578 = vmax.xlane.f32.xlu0 %v577_v38  ;;  %v574_v40 = vsel %vm573_vm3, %v571_v39, -inf  ;;  %v598_v38 = vsub.s32 7, %v2183_v13 }
 0x276   :  { %575 = vmax.xlane.f32.xlu1 %v574_v40 }
 0x287   :  { %711 = vperm.xlu1 %1882, %v701_v41  }
 0x28b   :  { %716 = vperm.xlu1 %1882, %v702_v42  }
 0x302   :  { %v579_v46 = vpop.xlane.xlu0 %578 }
 0x303   :  { %v581_v48 = vsub.f32 %v572_v36, %v579_v46  ;;  %v576_v51 = vpop.xlane.xlu1 %575 }
 0x304   :  { %v580_v52 = vsub.f32 %v571_v39, %v576_v51  ;;  %v599_v39 = vrot.slane %v2129_v1, %v598_v38 }
 0x305   :  { %v584_v54 = vmul.f32 1.442695, %v581_v48 }
 0x306   :  { %v582_v56 = vmul.f32 1.442695, %v580_v52 }
 0x307   :  { %1884 = vpow2.f32 %v584_v54  ;;  %v712_v58 = vpop.permute.xlu1 %711 }
 0x308   :  { %v757_v62 = vmul.f32 %v2288_v53, %v712_v58  ;;  %1886 = vpow2.f32 %v582_v56  ;;  %v758_v7 = vmul.f32 %v2294_v2, %v712_v58 }
 0x30a   :  { %v781_v63 = vadd.f32 %v2290_v57, %v757_v62  ;;  %v782_v17 = vadd.f32 %v2297_v8, %v758_v7 }
 0x30c   :  { %v872_v5 = vadd.f32 %v867_v43, %v781_v63  ;;  %v873_v19 = vadd.f32 %v869_v44, %v782_v17  ;;  %v717_v44 = vpop.permute.xlu1 %716  ;;  %v703_v63 = vld [vmem:[%s2453_s4 + $0x4] sm:$0x3] }
 0x30d   :  { %v759_v45 = vmul.f32 %v2288_v53, %v717_v44  ;;  %v760_v1 = vmul.f32 %v2294_v2, %v717_v44 }
 0x30e   :  { %v1644_v6 = vmul.f32 -1.442695, %v872_v5  ;;  %v1645_v24 = vmul.f32 -1.442695, %v873_v19 }
 0x30f   :  { %v783_v12 = vadd.f32 %v2290_v57, %v759_v45  ;;  %v784_v13 = vadd.f32 %v2297_v8, %v760_v1 }
 0x310   :  { %1888 = vpow2.f32 %v1644_v6 }
 0x311   :  { %v1885_v11 = vpop.eup %1884  ;;  %1890 = vtanh.f32 %v873_v19 }
 0x312   :  { %v589_v14 = vsel %vm573_vm3, %v1885_v11, 0.0  ;;  %v1887_v16 = vpop.eup %1886 }
 0x313   :  { %590 = vadd.xlane.f32.xlu0 %v589_v14  ;;  %v586_v18 = vsel %vm573_vm3, %v1887_v16, 0.0 }
 0x317   :  { %587 = vadd.xlane.f32.xlu0 %v586_v18 }
 0x31a   :  { %v1889_v49 = vpop.eup %1888 }
 0x31b   :  { %v880_v20 = vadd.f32 1.0, %v1889_v49  ;;  %v1891_v21 = vpop.eup %1890 }
 0x31d   :  { %1892 = vrcp.f32 %v880_v20 }
 0x31e   :  { %1894 = vpow2.f32 %v1645_v24 }
 0x327   :  { %v1893_v22 = vpop.eup %1892 }
 0x328   :  { %v888_v23 = vmul.f32 %v1893_v22, %v1891_v21  ;;  %v1895_v27 = vpop.eup %1894  ;;  %v887_v50 = vmul.f32 0.0, %v1893_v22 }
 0x329   :  { %v881_v34 = vadd.f32 1.0, %v1895_v27 }
 0x32d   :  { %890 = vrot.lane.b32.xlu0 %v888_v23, %s2066_s17 }
 0x3a0   :  { %v591_v25 = vpop.xlane.xlu0 %590 }
 0x3a1   :  { %1896 = vrcp.f32 %v591_v25 }
 0x3a4   :  { %v588_v26 = vpop.xlane.xlu0 %587 }
 0x3a5   :  { %1898 = vrcp.f32 %v588_v26 }
 0x3a8   :  { %v891_v28 = vpop.permute.xlu0 %890 }
 0x3a9   :  { %v2303_v31 = vadd.f32 %v891_v28, %v887_v50 }
 0x3ab   :  { %v1897_v29 = vpop.eup %1896  ;;  %1900 = vtanh.f32 %v2303_v31 }
 0x3ac   :  { %v595_v33 = vmul.f32 %v1897_v29, %v1885_v11  ;;  %1902 = vrcp.f32 %v881_v34  ;;  %v705_v34 = vld [vmem:[%s2453_s4 + $0x8] sm:$0x3] }
 0x3af   :  { %v1899_v30 = vpop.eup %1898 }
 0x3b0   :  { %v594_v32 = vmul.f32 %v1899_v30, %v1887_v16 }
 0x3b2   :  { %1730 = vmatprep.mubr.msk.f32.mxu0 %vm573_vm3, %v594_v32 }
 0x3b3   :  { %1731 = vmatmul.mubr.msk.f32.vlgmr.msra.gmra.mrb[6].mxu0 %vm573_vm3, %v595_v33  ;;  %v704_v33 = vld [vmem:[%s2453_s4 + $0x6] sm:$0x3] }
 0x3b4   :  { %1762 = vmatpush1.bf16.msra.mxu0 %v2220_v59  ;;  %963 = vmatprep.mubr.f32.mxu0 %v2063_v0 }
 0x3b5   :  { %1764 = vmatprep.subr.bf16.mxu0 %v2222_v60  ;;  %v1901_v35 = vpop.eup %1900 }
 0x3b6   :  { %v1903_v36 = vpop.eup %1902 }
 0x3b7   :  { %v895_v37 = vmul.f32 %v1903_v36, %v1901_v35  ;;  %v706_v35 = vld [vmem:[%s2453_s4 + $0xa] sm:$0x3]  ;;  %v707_v36 = vld [vmem:[%s2453_s4 + $0xc] sm:$0x3] }
 0x3b8   :  { %1766 = vmatpush1.bf16.msra.mxu0 %v2226_v3 }
 0x3b9   :  { %1768 = vmatprep.subr.bf16.mxu0 %v2229_v4 }
 0x3bc   :  { %1770 = vmatpush1.bf16.msra.mxu0 %v2232_v9 }
 0x3bd   :  { %1772 = vmatprep.subr.bf16.mxu0 %v2235_v10 }
 0x3c0   :  { %1774 = vmatpush1.bf16.msra.mxu0 %v2238_v15 }
 0x3c1   :  { %1792 = vmatprep.subr.bf16.mxu0 %v2218_v55 }
 0x3c3   :  { %1646 = vmatmul.mubr.msk.f32.vlgmr.msra.gmra.mrb[8].mxu0 %vm797_vm8, %v895_v37  ;;  %v708_v37 = vld [vmem:[%s2453_s4 + $0xe] sm:$0x3]  ;;  %s2067_s4 = smov [#allocation5]  }
 0x3c4   :  { %1794 = vmatpush1.bf16.msra.mxu0 %v2220_v59  ;;  %1159 = vmatprep.mubr.f32.mxu0 %v2063_v0  ;;  %s1589_s29 = sshll.u32 %s2067_s4, 4  ;;  %s1590_s29 = int_to_ptr.vmem [resolvable:$true] %s1589_s29 }
 0x3c5   :  { %1796 = vmatprep.subr.bf16.mxu0 %v2222_v60  ;;  %s2010_s30 = scalar_lea.vmem %s1590_s29, 256  ;;  %p2015_p9 = scmp.lt.s32.totalorder %s1590_s29, %s1590_s29 }
 0x3c6   :  { %p2011_p8 = scmp.ne.s32.totalorder %s1590_s29, %s2010_s30  ;;  %p2016_p10 = scmp.lt.s32.totalorder %s2010_s30, %s2010_s30 }
 0x3c8   :  { %1798 = vmatpush1.bf16.msra.mxu0 %v2226_v3  ;;  %p2017_p11 = por %p2016_p10, %p2015_p9 }
 0x3c9   :  { %1800 = vmatprep.subr.bf16.mxu0 %v2229_v4 }
 0x3ca   :  { %p2018_p12 = pnand %p2017_p11, %p2011_p8 }
 0x3cc   :  { %1802 = vmatpush1.bf16.msra.mxu0 %v2232_v9 }
 0x3cd   :  { %1804 = vmatprep.subr.bf16.mxu0 %v2235_v10 }
 0x3d0   :  { %1806 = vmatpush1.bf16.msra.mxu0 %v2238_v15 }
 0x3d1   :  { %1824 = vmatprep.subr.bf16.mxu0 %v2218_v55 }
 0x486   :  { %v1732_v40 = vpop.f32.mrb[6].mxu0 }
 0x487   :  { %v678_v41 = vadd.f32 %v1732_v40, %v599_v39  ;;  %v672_v42 = vpop.f32.mrb[7].mxu0 }
 0x488   :  { %v673_v43 = vadd.f32 %v672_v42, %v599_v39 }
 0x489   :  { %682 = vst.msk [vmem:[#allocation5 + $0x8] sm:$0xff] %vm133_vm4, %v678_v41 }
 0x48a   :  { %681 = vst.msk [vmem:[#allocation5] sm:$0xff] %vm133_vm4, %v673_v43 }
 0x496   :  { %v965_v46 = vpop.f32.mrb[8].mxu0 }
 0x497   :  { %v970_v47 = vadd.f32 %v965_v46, %v783_v12  ;;  %v967_v48 = vpop.f32.mrb[9].mxu0 }
 0x498   :  { %v971_v52 = vadd.f32 %v967_v48, %v784_v13 }
 0x499   :  { %v1647_v51 = vmul.f32 -1.442695, %v970_v47 }
 0x49a   :  { %v1648_v5 = vmul.f32 -1.442695, %v971_v52 }
 0x49b   :  { %1904 = vpow2.f32 %v1647_v51 }
 0x49c   :  { %1906 = vtanh.f32 %v971_v52 }
 0x4a5   :  { %v1905_v54 = vpop.eup %1904 }
 0x4a6   :  { %v978_v56 = vadd.f32 1.0, %v1905_v54  ;;  %v1907_v58 = vpop.eup %1906 }
 0x4a8   :  { %1908 = vrcp.f32 %v978_v56 }
 0x4a9   :  { %1910 = vpow2.f32 %v1648_v5 }
 0x4b2   :  { %v1909_v61 = vpop.eup %1908 }
 0x4b3   :  { %v986_v62 = vmul.f32 %v1909_v61, %v1907_v58  ;;  %v1911_v6 = vpop.eup %1910  ;;  %v985_v11 = vmul.f32 %v1909_v61, %v2303_v31 }
 0x4b4   :  { %v979_v7 = vadd.f32 1.0, %v1911_v6 }
 0x4b5   :  { %988 = vrot.lane.b32.xlu1 %v986_v62, %s2066_s17 }
 0x4b6   :  { %1912 = vrcp.f32 %v979_v7 }
 0x4b9   :  { %721 = vperm.xlu1 %1882, %v703_v63  }
 0x4c0   :  { %v1913_v17 = vpop.eup %1912 }
 0x527   :  { %v989_v14 = vpop.permute.xlu1 %988 }
 0x528   :  { %v991_v16 = vadd.f32 %v989_v14, %v985_v11 }
 0x52a   :  { %1914 = vtanh.f32 %v991_v16 }
 0x534   :  { %v1915_v18 = vpop.eup %1914 }
 0x535   :  { %v993_v19 = vmul.f32 %v1915_v18, %v1913_v17 }
 0x537   :  { %1649 = vmatmul.mubr.msk.f32.vlgmr.msra.gmra.mrb[16].mxu1 %vm797_vm8, %v993_v19 }
 0x538   :  { %1810 = vmatpush1.bf16.msra.mxu1 %v2220_v59  ;;  %1257 = vmatprep.mubr.f32.mxu1 %v2063_v0  ;;  %v722_v49 = vpop.permute.xlu1 %721 }
 0x539   :  { %1812 = vmatprep.subr.bf16.mxu1 %v2222_v60  ;;  %v761_v20 = vmul.f32 %v2288_v53, %v722_v49  ;;  %v762_v26 = vmul.f32 %v2294_v2, %v722_v49 }
 0x53b   :  { %v785_v21 = vadd.f32 %v2290_v57, %v761_v20  ;;  %v786_v27 = vadd.f32 %v2297_v8, %v762_v26 }
 0x53c   :  { %1814 = vmatpush1.bf16.msra.mxu1 %v2226_v3 }
 0x53d   :  { %1816 = vmatprep.subr.bf16.mxu1 %v2229_v4 }
 0x540   :  { %1818 = vmatpush1.bf16.msra.mxu1 %v2232_v9 }
 0x541   :  { %1820 = vmatprep.subr.bf16.mxu1 %v2235_v10 }
 0x544   :  { %1822 = vmatpush1.bf16.msra.mxu1 %v2238_v15 }
 0x545   :  { %1840 = vmatprep.subr.bf16.mxu1 %v2218_v55 }
 0x60a   :  { %v1063_v22 = vpop.f32.mrb[16].mxu1 }
 0x60b   :  { %v1068_v23 = vadd.f32 %v1063_v22, %v785_v21  ;;  %v1065_v24 = vpop.f32.mrb[17].mxu1 }
 0x60c   :  { %v1069_v28 = vadd.f32 %v1065_v24, %v786_v27 }
 0x60d   :  { %v1650_v25 = vmul.f32 -1.442695, %v1068_v23 }
 0x60e   :  { %v1651_v38 = vmul.f32 -1.442695, %v1069_v28 }
 0x60f   :  { %1916 = vpow2.f32 %v1650_v25 }
 0x610   :  { %1918 = vtanh.f32 %v1069_v28 }
 0x619   :  { %v1917_v29 = vpop.eup %1916 }
 0x61a   :  { %v1076_v50 = vadd.f32 1.0, %v1917_v29  ;;  %v1919_v30 = vpop.eup %1918 }
 0x61c   :  { %1920 = vrcp.f32 %v1076_v50 }
 0x61d   :  { %1922 = vpow2.f32 %v1651_v38 }
 0x626   :  { %v1921_v31 = vpop.eup %1920 }
 0x627   :  { %v1084_v32 = vmul.f32 %v1921_v31, %v1919_v30  ;;  %v1923_v39 = vpop.eup %1922  ;;  %v1083_v41 = vmul.f32 %v1921_v31, %v991_v16 }
 0x628   :  { %v1077_v40 = vadd.f32 1.0, %v1923_v39 }
 0x629   :  { %1086 = vrot.lane.b32.xlu1 %v1084_v32, %s2066_s17 }
 0x62a   :  { %1924 = vrcp.f32 %v1077_v40 }
 0x62d   :  { %726 = vperm.xlu1 %1882, %v704_v33  }
 0x631   :  { %731 = vperm.xlu1 %1882, %v705_v34  }
 0x634   :  { %v1925_v44 = vpop.eup %1924 }
 0x635   :  { %736 = vperm.xlu1 %1882, %v706_v35  }
 0x639   :  { %741 = vperm.xlu1 %1882, %v707_v36  }
 0x63d   :  { %746 = vperm.xlu1 %1882, %v708_v37  }
 0x69b   :  { %v1087_v42 = vpop.permute.xlu1 %1086 }
 0x69c   :  { %v1089_v43 = vadd.f32 %v1087_v42, %v1083_v41 }
 0x69e   :  { %1926 = vtanh.f32 %v1089_v43 }
 0x6a8   :  { %v1927_v45 = vpop.eup %1926 }
 0x6a9   :  { %v1091_v12 = vmul.f32 %v1927_v45, %v1925_v44 }
 0x6ab   :  { %1652 = vmatmul.mubr.msk.f32.vlgmr.msra.gmra.mrb[10].mxu0 %vm797_vm8, %v1091_v12 }
 0x6ac   :  { %1826 = vmatpush1.bf16.msra.mxu0 %v2220_v59  ;;  %1355 = vmatprep.mubr.f32.mxu0 %v2063_v0  ;;  %v727_v46 = vpop.permute.xlu1 %726 }
 0x6ad   :  { %1828 = vmatprep.subr.bf16.mxu0 %v2222_v60  ;;  %v763_v47 = vmul.f32 %v2288_v53, %v727_v46  ;;  %v764_v54 = vmul.f32 %v2294_v2, %v727_v46 }
 0x6af   :  { %v787_v48 = vadd.f32 %v2290_v57, %v763_v47  ;;  %v788_v56 = vadd.f32 %v2297_v8, %v764_v54 }
 0x6b0   :  { %1830 = vmatpush1.bf16.msra.mxu0 %v2226_v3  ;;  %v732_v20 = vpop.permute.xlu1 %731 }
 0x6b1   :  { %1832 = vmatprep.subr.bf16.mxu0 %v2229_v4  ;;  %v765_v21 = vmul.f32 %v2288_v53, %v732_v20  ;;  %v766_v27 = vmul.f32 %v2294_v2, %v732_v20 }
 0x6b3   :  { %v789_v22 = vadd.f32 %v2290_v57, %v765_v21  ;;  %v790_v28 = vadd.f32 %v2297_v8, %v766_v27 }
 0x6b4   :  { %1834 = vmatpush1.bf16.msra.mxu0 %v2232_v9 }
 0x6b5   :  { %1836 = vmatprep.subr.bf16.mxu0 %v2235_v10 }
 0x6b8   :  { %1838 = vmatpush1.bf16.msra.mxu0 %v2238_v15 }
 0x6b9   :  { %1856 = vmatprep.subr.bf16.mxu0 %v2218_v55 }
 0x77e   :  { %v1161_v51 = vpop.f32.mrb[10].mxu0 }
 0x77f   :  { %v1166_v1 = vadd.f32 %v1161_v51, %v787_v48  ;;  %v1163_v13 = vpop.f32.mrb[11].mxu0 }
 0x780   :  { %v1167_v58 = vadd.f32 %v1163_v13, %v788_v56 }
 0x781   :  { %v1653_v52 = vmul.f32 -1.442695, %v1166_v1 }
 0x782   :  { %v1654_v6 = vmul.f32 -1.442695, %v1167_v58 }
 0x783   :  { %1928 = vpow2.f32 %v1653_v52 }
 0x784   :  { %1930 = vtanh.f32 %v1167_v58 }
 0x78d   :  { %v1929_v61 = vpop.eup %1928 }
 0x78e   :  { %v1174_v62 = vadd.f32 1.0, %v1929_v61  ;;  %v1931_v55 = vpop.eup %1930 }
 0x790   :  { %1932 = vrcp.f32 %v1174_v62 }
 0x791   :  { %1934 = vpow2.f32 %v1654_v6 }
 0x79a   :  { %v1933_v63 = vpop.eup %1932 }
 0x79b   :  { %v1182_v5 = vmul.f32 %v1933_v63, %v1931_v55  ;;  %v1935_v7 = vpop.eup %1934  ;;  %v1181_v14 = vmul.f32 %v1933_v63, %v1089_v43  ;;  %v737_v43 = vpop.permute.xlu1 %736 }
 0x79c   :  { %v1175_v11 = vadd.f32 1.0, %v1935_v7  ;;  %v767_v44 = vmul.f32 %v2288_v53, %v737_v43 }
 0x79d   :  { %1184 = vrot.lane.b32.xlu0 %v1182_v5, %s2066_s17 }
 0x79e   :  { %1936 = vrcp.f32 %v1175_v11  ;;  %v791_v45 = vadd.f32 %v2290_v57, %v767_v44 }
 0x79f   :  { %v742_v55 = vpop.permute.xlu1 %741 }
 0x7a0   :  { %v769_v63 = vmul.f32 %v2288_v53, %v742_v55 }
 0x7a2   :  { %v793_v5 = vadd.f32 %v2290_v57, %v769_v63 }
 0x7a8   :  { %v1937_v18 = vpop.eup %1936 }
 0x80f   :  { %v1185_v16 = vpop.permute.xlu0 %1184 }
 0x810   :  { %v1187_v17 = vadd.f32 %v1185_v16, %v1181_v14  ;;  %v770_v16 = vmul.f32 %v2294_v2, %v742_v55 }
 0x812   :  { %1938 = vtanh.f32 %v1187_v17 }
 0x81c   :  { %v1939_v19 = vpop.eup %1938 }
 0x81d   :  { %v1189_v49 = vmul.f32 %v1939_v19, %v1937_v18 }
 0x81f   :  { %1655 = vmatmul.mubr.msk.f32.vlgmr.msra.gmra.mrb[18].mxu1 %vm797_vm8, %v1189_v49 }
 0x820   :  { %1842 = vmatpush1.bf16.msra.mxu1 %v2220_v59  ;;  %1453 = vmatprep.mubr.f32.mxu1 %v2063_v0 }
 0x821   :  { %1844 = vmatprep.subr.bf16.mxu1 %v2222_v60 }
 0x824   :  { %1846 = vmatpush1.bf16.msra.mxu1 %v2226_v3 }
 0x825   :  { %1848 = vmatprep.subr.bf16.mxu1 %v2229_v4 }
 0x828   :  { %1850 = vmatpush1.bf16.msra.mxu1 %v2232_v9 }
 0x829   :  { %1852 = vmatprep.subr.bf16.mxu1 %v2235_v10 }
 0x82c   :  { %1854 = vmatpush1.bf16.msra.mxu1 %v2238_v15 }
 0x8f2   :  { %v1259_v23 = vpop.f32.mrb[18].mxu1 }
 0x8f3   :  { %v1264_v24 = vadd.f32 %v1259_v23, %v789_v22  ;;  %v1261_v25 = vpop.f32.mrb[19].mxu1 }
 0x8f4   :  { %v1265_v29 = vadd.f32 %v1261_v25, %v790_v28 }
 0x8f5   :  { %v1656_v26 = vmul.f32 -1.442695, %v1264_v24 }
 0x8f6   :  { %v1657_v34 = vmul.f32 -1.442695, %v1265_v29 }
 0x8f7   :  { %1940 = vpow2.f32 %v1656_v26 }
 0x8f8   :  { %1942 = vtanh.f32 %v1265_v29 }
 0x901   :  { %v1941_v50 = vpop.eup %1940 }
 0x902   :  { %v1272_v30 = vadd.f32 1.0, %v1941_v50  ;;  %v1943_v31 = vpop.eup %1942 }
 0x904   :  { %1944 = vrcp.f32 %v1272_v30 }
 0x905   :  { %1946 = vpow2.f32 %v1657_v34 }
 0x90e   :  { %v1945_v32 = vpop.eup %1944 }
 0x90f   :  { %v1280_v33 = vmul.f32 %v1945_v32, %v1943_v31  ;;  %v1947_v35 = vpop.eup %1946  ;;  %v1279_v37 = vmul.f32 %v1945_v32, %v1187_v17  ;;  %v794_v17 = vadd.f32 %v2297_v8, %v770_v16  ;;  %v747_v31 = vpop.permute.xlu1 %746 }
 0x910   :  { %v1273_v36 = vadd.f32 1.0, %v1947_v35  ;;  %v771_v32 = vmul.f32 %v2288_v53, %v747_v31 }
 0x911   :  { %1282 = vrot.lane.b32.xlu0 %v1280_v33, %s2066_s17 }
 0x912   :  { %1948 = vrcp.f32 %v1273_v36  ;;  %v795_v33 = vadd.f32 %v2290_v57, %v771_v32 }
 0x91c   :  { %v1949_v40 = vpop.eup %1948 }
 0x983   :  { %v1283_v38 = vpop.permute.xlu0 %1282 }
 0x984   :  { %v1285_v39 = vadd.f32 %v1283_v38, %v1279_v37  ;;  %v772_v38 = vmul.f32 %v2294_v2, %v747_v31 }
 0x986   :  { %1950 = vtanh.f32 %v1285_v39 }
 0x990   :  { %v1951_v41 = vpop.eup %1950 }
 0x991   :  { %v1287_v42 = vmul.f32 %v1951_v41, %v1949_v40 }
 0x993   :  { %1658 = vmatmul.mubr.msk.f32.vlgmr.msra.gmra.mrb[12].mxu0 %vm797_vm8, %v1287_v42 }
 0x994   :  { %1858 = vmatpush1.bf16.msra.mxu0 %v2220_v59  ;;  %1551 = vmatprep.mubr.f32.mxu0 %v2063_v0 }
 0x995   :  { %1860 = vmatprep.subr.bf16.mxu0 %v2222_v60  ;;  %v768_v60 = vmul.f32 %v2294_v2, %v737_v43 }
 0x998   :  { %1862 = vmatpush1.bf16.msra.mxu0 %v2226_v3  ;;  %v792_v3 = vadd.f32 %v2297_v8, %v768_v60 }
 0x999   :  { %1864 = vmatprep.subr.bf16.mxu0 %v2229_v4 }
 0x99c   :  { %1866 = vmatpush1.bf16.msra.mxu0 %v2232_v9 }
 0x99d   :  { %1868 = vmatprep.subr.bf16.mxu0 %v2235_v10 }
 0x9a0   :  { %1870 = vmatpush1.bf16.msra.mxu0 %v2238_v15 }
 0xa66   :  { %v1357_v59 = vpop.f32.mrb[12].mxu0 }
 0xa67   :  { %v1362_v12 = vadd.f32 %v1357_v59, %v791_v45  ;;  %v1359_v0 = vpop.f32.mrb[13].mxu0 }
 0xa68   :  { %v1363_v4 = vadd.f32 %v1359_v0, %v792_v3 }
 0xa69   :  { %v1659_v46 = vmul.f32 -1.442695, %v1362_v12 }
 0xa6a   :  { %v1660_v51 = vmul.f32 -1.442695, %v1363_v4 }
 0xa6b   :  { %1952 = vpow2.f32 %v1659_v46 }
 0xa6c   :  { %1954 = vtanh.f32 %v1363_v4 }
 0xa75   :  { %v1953_v9 = vpop.eup %1952 }
 0xa76   :  { %v1370_v47 = vadd.f32 1.0, %v1953_v9  ;;  %v1955_v10 = vpop.eup %1954 }
 0xa78   :  { %1956 = vrcp.f32 %v1370_v47 }
 0xa79   :  { %1958 = vpow2.f32 %v1660_v51 }
 0xa82   :  { %v1957_v15 = vpop.eup %1956 }
 0xa83   :  { %v1378_v48 = vmul.f32 %v1957_v15, %v1955_v10  ;;  %v1959_v1 = vpop.eup %1958  ;;  %v1377_v52 = vmul.f32 %v1957_v15, %v1285_v39  ;;  %v796_v39 = vadd.f32 %v2297_v8, %v772_v38 }
 0xa84   :  { %v1371_v13 = vadd.f32 1.0, %v1959_v1 }
 0xa85   :  { %1380 = vrot.lane.b32.xlu0 %v1378_v48, %s2066_s17 }
 0xa86   :  { %1960 = vrcp.f32 %v1371_v13 }
 0xa90   :  { %v1961_v58 = vpop.eup %1960 }
 0xaf7   :  { %v1381_v54 = vpop.permute.xlu0 %1380 }
 0xaf8   :  { %v1383_v56 = vadd.f32 %v1381_v54, %v1377_v52 }
 0xafa   :  { %1962 = vtanh.f32 %v1383_v56 }
 0xb04   :  { %v1963_v61 = vpop.eup %1962 }
 0xb05   :  { %v1385_v62 = vmul.f32 %v1963_v61, %v1961_v58 }
 0xb07   :  { %1661 = vmatmul.mubr.msk.f32.vlgmr.msra.gmra.mrb[20].mxu1 %vm797_vm8, %v1385_v62 }
 0xbda   :  { %v1455_v6 = vpop.f32.mrb[20].mxu1 }
 0xbdb   :  { %v1460_v7 = vadd.f32 %v1455_v6, %v793_v5  ;;  %v1457_v11 = vpop.f32.mrb[21].mxu1 }
 0xbdc   :  { %v1461_v18 = vadd.f32 %v1457_v11, %v794_v17 }
 0xbdd   :  { %v1662_v14 = vmul.f32 -1.442695, %v1460_v7 }
 0xbde   :  { %v1663_v23 = vmul.f32 -1.442695, %v1461_v18 }
 0xbdf   :  { %1964 = vpow2.f32 %v1662_v14 }
 0xbe0   :  { %1966 = vtanh.f32 %v1461_v18 }
 0xbe9   :  { %v1965_v19 = vpop.eup %1964 }
 0xbea   :  { %v1468_v49 = vadd.f32 1.0, %v1965_v19  ;;  %v1967_v20 = vpop.eup %1966 }
 0xbec   :  { %1968 = vrcp.f32 %v1468_v49 }
 0xbed   :  { %1970 = vpow2.f32 %v1663_v23 }
 0xbf6   :  { %v1969_v21 = vpop.eup %1968 }
 0xbf7   :  { %v1476_v22 = vmul.f32 %v1969_v21, %v1967_v20  ;;  %v1971_v24 = vpop.eup %1970  ;;  %v1475_v26 = vmul.f32 %v1969_v21, %v1383_v56 }
 0xbf8   :  { %v1469_v25 = vadd.f32 1.0, %v1971_v24 }
 0xbf9   :  { %1478 = vrot.lane.b32.xlu0 %v1476_v22, %s2066_s17 }
 0xbfa   :  { %1972 = vrcp.f32 %v1469_v25 }
 0xc04   :  { %v1973_v29 = vpop.eup %1972 }
 0xc6b   :  { %v1479_v27 = vpop.permute.xlu0 %1478 }
 0xc6c   :  { %v1481_v28 = vadd.f32 %v1479_v27, %v1475_v26 }
 0xc6e   :  { %1974 = vtanh.f32 %v1481_v28 }
 0xc78   :  { %v1975_v50 = vpop.eup %1974 }
 0xc79   :  { %v1483_v30 = vmul.f32 %v1975_v50, %v1973_v29 }
 0xc7b   :  { %1664 = vmatmul.mubr.msk.f32.vlgmr.msra.gmra.mrb[14].mxu0 %vm797_vm8, %v1483_v30 }
 0xd4e   :  { %v1553_v34 = vpop.f32.mrb[14].mxu0 }
 0xd4f   :  { %v1558_v35 = vadd.f32 %v1553_v34, %v795_v33  ;;  %v1555_v36 = vpop.f32.mrb[15].mxu0 }
 0xd50   :  { %v1559_v40 = vadd.f32 %v1555_v36, %v796_v39 }
 0xd51   :  { %v1665_v37 = vmul.f32 -1.442695, %v1558_v35 }
 0xd53   :  { %1976 = vpow2.f32 %v1665_v37 }
 0xd54   :  { %1978 = vtanh.f32 %v1559_v40 }
 0xd5d   :  { %v1977_v41 = vpop.eup %1976 }
 0xd5e   :  { %v1566_v42 = vadd.f32 1.0, %v1977_v41 }
 0xd60   :  { %1980 = vrcp.f32 %v1566_v42 }
 0xd61   :  { %2021 = shalt.err (!%p2018_p12)
}
 0xd62   :  { %s2022_s10 = scalar_lea.hbm %s2455_s6, 256 }
 0xd63   :  { %p2023_p13 = scmp.ne.s32.totalorder %s2455_s6, %s2022_s10  ;;  %p2026_p0 = scmp.lt.u32.totalorder %s2022_s10, %s2455_s6 }
 0xd65   :  { %p2028_p1 = pnand %p2026_p0, %p2023_p13 }
 0xd67   :  { %2031 = shalt.err (!%p2028_p1)
}
 0xd68   :  { %s2068_s3 = smov 128   ;;  %s2069_s13 = smov 8   ;;  %v1979_v53 = vpop.eup %1978  ;;  %v1666_v8 = vmul.f32 -1.442695, %v1559_v40  ;;  %vm1582_vm4 = vcmask 517120  }
 0xd69   :  { %1595 = dma.vmem_to_hbm [thread:$0]  %s1590_s29, 256, %s2455_s6, [#allocation4], %s2068_s3, %s2068_s3, %s2069_s13  }
 0xd6a   :  { %v1981_v57 = vpop.eup %1980  ;;  %1982 = vpow2.f32 %v1666_v8  ;;  %s2070_s15 = smov [#allocation6]  }
 0xd6b   :  { %v1574_v2 = vmul.f32 %v1981_v57, %v1979_v53  ;;  %v1573_v45 = vmul.f32 %v1981_v57, %v1481_v28  ;;  %s1602_s16 = sshll.u32 %s2070_s15, 4  ;;  %s1603_s16 = int_to_ptr.vmem [resolvable:$true] %s1602_s16 }
 0xd6c   :  { %s2032_s6 = scalar_lea.vmem %s1603_s16, 32  ;;  %p2037_p3 = scmp.lt.s32.totalorder %s1603_s16, %s1603_s16 }
 0xd6d   :  { %1576 = vrot.lane.b32.xlu0 %v1574_v2, %s2066_s17  ;;  %p2033_p2 = scmp.ne.s32.totalorder %s1603_s16, %s2032_s6  ;;  %p2038_p4 = scmp.lt.s32.totalorder %s2032_s6, %s2032_s6 }
 0xd6f   :  { %p2039_p5 = por %p2038_p4, %p2037_p3 }
 0xd71   :  { %p2040_p6 = pnand %p2039_p5, %p2033_p2 }
 0xd74   :  { %v1983_v43 = vpop.eup %1982 }
 0xd75   :  { %v1567_v44 = vadd.f32 1.0, %v1983_v43 }
 0xd77   :  { %1984 = vrcp.f32 %v1567_v44 }
 0xd81   :  { %v1985_v0 = vpop.eup %1984 }
 0xddf   :  { %v1577_v59 = vpop.permute.xlu0 %1576 }
 0xde0   :  { %v1579_v12 = vadd.f32 %v1577_v59, %v1573_v45 }
 0xde2   :  { %1986 = vtanh.f32 %v1579_v12 }
 0xdec   :  { %v1987_v46 = vpop.eup %1986 }
 0xded   :  { %v1581_v60 = vmul.f32 %v1987_v46, %v1985_v0 }
 0xdef   :  { %1583 = vst.msk [vmem:[#allocation6] sm:$0x3] %vm1582_vm4, %v1581_v60 }
 0xdf0   :  { %2043 = shalt.err (!%p2040_p6)
}
 0xdf1   :  { %s2044_s5 = scalar_lea.hbm %s2456_s7, 32 }
 0xdf2   :  { %p2045_p7 = scmp.ne.s32.totalorder %s2456_s7, %s2044_s5  ;;  %p2048_p8 = scmp.lt.u32.totalorder %s2044_s5, %s2456_s7 }
 0xdf4   :  { %p2050_p9 = pnand %p2048_p8, %p2045_p7 }
 0xdf6   :  { %2053 = shalt.err (!%p2050_p9)
}
 0xdf7   :  { %1605 = dma.vmem_to_hbm [thread:$0]  %s1603_s16, 32, %s2456_s7, [#allocation7]  }
 0xdf8   :  { %2056 = dma.done.wait [#allocation4], 256  }
 0xdf9   :  { %2057 = vsyncadd [#allocation4], 4294967040 }
 0xdfa   :  { %2058 = dma.done.wait [#allocation7], 32  }
 0xdfb   :  { %2059 = vsyncadd [#allocation7], 4294967264 }
 0xdfc   :  { %1612 = vsyncpa [#allocation3], 1 }
 0xdfd   :  { %1613 = vsyncpa [#allocation4], 1 }
 0xdfe   :  { %1614 = vsyncpa [#allocation7], 1 }

</bundles_post_ra>
